<compile_context>
chip_gen: v7x
topology: tpu7x:2x2x1
jax: 0.10.0
libtpu: 0.0.40
codegen_flags: <defaults>
</compile_context>

<pallas_src>
import jax
import jax.numpy as jnp
from jax.experimental import pallas as pl
from jax.experimental.pallas import tpu as pltpu

FEAT_C = 512       # feature channels feeding nn.Linear(512, 1)
CIN_PAD = 8        # pad (3 image channels + 1 ones/bias channel) up to 8


def _make_kernel(p_true, feat_c):
    """Kernel closure over static shape info."""
    inv_p = float(1.0 / p_true)

    def kernel(img_ref, w_ref, w_out_ref, b_out_ref, tgt_ref,
               out_ref, bce_ref, acc_ref):
        b = pl.program_id(0)
        p_idx = pl.program_id(1)

        @pl.when(p_idx == 0)
        def _init():
            acc_ref[...] = jnp.zeros_like(acc_ref)

        # ---- stand-in "features": 1x1 conv as (512,8)@(8,p_tile) bf16 matmul.
        # Bias rides in the ones-channel row of w, so there is no separate
        # bias add; zero-padded spatial columns are exactly 0 after ReLU.
        x = img_ref[0]                                   # (CIN_PAD, p_tile) bf16
        feat = jnp.dot(w_ref[...], x,
                       preferred_element_type=jnp.float32)   # (512, p_tile) f32

        # ---- adaptive_avg_pool2d folded into a running sum over P tiles.
        # Single fused relu+reduce pass; accumulate into resident (512,1) f32.
        acc_ref[...] += jnp.sum(jnp.maximum(feat, 0.0), axis=1, keepdims=True)

        @pl.when(p_idx == pl.num_programs(1) - 1)
        def _finalize():
            pooled = acc_ref[...] * jnp.float32(inv_p)            # (512, 1)
            # nn.Linear(512, 1) as VPU multiply + reduce (avoid N=1 MXU matmul)
            logit = (jnp.sum(pooled * w_out_ref[...], axis=0, keepdims=True)
                     + b_out_ref[0])                              # (1, 1)
            out_ref[0] = logit
            # per-sample BCEWithLogits (numerically stable); label from SMEM
            y = tgt_ref[b]
            bce_ref[0] = (jnp.maximum(logit, 0.0) - logit * y
                          + jnp.log1p(jnp.exp(-jnp.abs(logit))))

    return kernel


def init_params(key):
    k1, k2, k3, k4 = jax.random.split(key, 4)
    w_stem = jax.random.normal(k1, (3, FEAT_C), jnp.float32) * 0.1
    b_stem = jax.random.normal(k2, (1, FEAT_C), jnp.float32) * 0.01
    w_out = jax.random.normal(k3, (FEAT_C, 1), jnp.float32) * (1.0 / FEAT_C ** 0.5)
    b_out = jax.random.normal(k4, (1, 1), jnp.float32) * 0.01
    return {'w_stem': w_stem, 'b_stem': b_stem, 'w_out': w_out, 'b_out': b_out}


def nasnet_forward(image, targets, params, *, max_p_tile=2048):
    """image: (B, C, H, W) float32 NCHW; targets: (B,) float/int labels."""
    assert max_p_tile % 128 == 0
    B, C, H, W = image.shape
    assert C + 1 <= CIN_PAD          # need one spare channel for the bias/ones trick
    P = H * W

    # Pad spatial axis up to a multiple of 128. Padded columns are all-zero
    # (including the ones-channel), so they contribute exactly 0 after ReLU —
    # no in-kernel masking is required. Invariant: padding only at the end of P.
    P_pad = max(128, ((P + 127) // 128) * 128)
    p_tile = min(max_p_tile, P_pad)
    while P_pad % p_tile != 0:
        p_tile -= 128
    NP = P_pad // p_tile

    # NCHW -> (B, Cpad, P): no transpose, P lands on the lane axis; bf16 stream.
    # Channel C (first unused) is the constant-ones channel carrying the bias.
    img = image.reshape(B, C, P).astype(jnp.float32)
    img = jnp.concatenate([img, jnp.ones((B, 1, P), jnp.float32)], axis=1)
    img = jnp.pad(img, ((0, 0), (0, CIN_PAD - (C + 1)), (0, P_pad - P)))
    img = img.astype(jnp.bfloat16)

    # Weights (tiny, one-time prep): fold b_stem into the ones-channel row.
    w_aug = jnp.concatenate(
        [params['w_stem'], params['b_stem'].reshape(1, FEAT_C)], axis=0)  # (C+1, 512)
    w_aug = jnp.pad(w_aug, ((0, CIN_PAD - (C + 1)), (0, 0)))              # (8, 512)
    w_stem_t = w_aug.T.astype(jnp.bfloat16)                               # (512, 8)

    w_out = params['w_out'].reshape(FEAT_C, 1).astype(jnp.float32)
    b_out = params['b_out'].reshape(1).astype(jnp.float32)   # SMEM scalar
    tgt = targets.reshape(B).astype(jnp.float32)              # SMEM per-sample labels

    kernel = _make_kernel(P, FEAT_C)

    grid_spec = pltpu.PrefetchScalarGridSpec(
        num_scalar_prefetch=0,
        grid=(B, NP),                      # reduction (P) axis last
        in_specs=[
            pl.BlockSpec((1, CIN_PAD, p_tile), lambda b, p: (b, 0, p)),  # image tile
            pl.BlockSpec((FEAT_C, CIN_PAD),    lambda b, p: (0, 0)),     # w_stem^T (+bias row)
            pl.BlockSpec((FEAT_C, 1),          lambda b, p: (0, 0)),     # w_out
            pl.BlockSpec(memory_space=pltpu.MemorySpace.SMEM),           # b_out (1,)
            pl.BlockSpec(memory_space=pltpu.MemorySpace.SMEM),           # targets (B,)
        ],
        out_specs=(
            pl.BlockSpec((1, 1, 1), lambda b, p: (b, 0, 0)),   # logit per sample
            pl.BlockSpec((1, 1, 1), lambda b, p: (b, 0, 0)),   # bce per sample
        ),
        scratch_shapes=[pltpu.VMEM((FEAT_C, 1), jnp.float32)],  # pooled-sum acc
    )

    logits, bce = pl.pallas_call(
        kernel,
        out_shape=(jax.ShapeDtypeStruct((B, 1, 1), jnp.float32),
                   jax.ShapeDtypeStruct((B, 1, 1), jnp.float32)),
        grid_spec=grid_spec,
        compiler_params=pltpu.CompilerParams(
            dimension_semantics=("parallel", "arbitrary")),
    )(img, w_stem_t, w_out, b_out, tgt)

    out = logits.reshape(B, 1)
    loss = jnp.mean(bce)          # mean reduction over the tiny (B,) vector
    return out, loss


def nasnet_reference(image, targets, params):
    """Pure-JAX reference (same bf16 rounding of the matmul inputs + bias)."""
    B, C, H, W = image.shape
    P = H * W
    x = image.reshape(B, C, P).astype(jnp.bfloat16).astype(jnp.float32)
    w = params['w_stem'].astype(jnp.bfloat16).astype(jnp.float32)      # (C, 512)
    b = params['b_stem'].reshape(1, FEAT_C, 1)
    b = b.astype(jnp.bfloat16).astype(jnp.float32)                      # bias bf16-rounded
    feat = jnp.einsum('cd,bcp->bdp', w, x)                              # (B, 512, P)
    feat = jnp.maximum(feat + b, 0.0)
    pooled = jnp.mean(feat, axis=2)                                     # (B, 512)
    logits = pooled @ params['w_out'] + params['b_out']                 # (B, 1)
    y = targets.reshape(B, 1).astype(jnp.float32)
    per = (jnp.maximum(logits, 0.0) - logits * y
           + jnp.log1p(jnp.exp(-jnp.abs(logits))))
    return logits, jnp.mean(per)


if __name__ == "__main__":
    key = jax.random.PRNGKey(0)
    k_img, k_tgt, k_par, k_img2, k_tgt2 = jax.random.split(key, 5)

    B, C, H, W = 2, 3, 16, 16
    image = jax.random.normal(k_img, (B, C, H, W), jnp.float32)
    targets = jax.random.bernoulli(k_tgt, 0.5, (B,)).astype(jnp.float32)
    params = init_params(k_par)

    # max_p_tile=128 -> 2 spatial tiles per sample: exercises the accumulator path.
    out, loss = nasnet_forward(image, targets, params, max_p_tile=128)
    jax.block_until_ready((out, loss))
    ref_out, ref_loss = nasnet_reference(image, targets, params)
    assert out.shape == (B, 1)
    assert loss.shape == ()
    assert jnp.allclose(out, ref_out, atol=1e-3, rtol=1e-3)
    assert jnp.allclose(loss, ref_loss, atol=1e-3, rtol=1e-3)

    # Ragged spatial size (P = 18*18 = 324, not a multiple of 128) exercises the
    # zero-padded-columns-contribute-zero invariant (no in-kernel mask needed).
    image2 = jax.random.normal(k_img2, (B, C, 18, 18), jnp.float32)
    targets2 = jax.random.bernoulli(k_tgt2, 0.5, (B,)).astype(jnp.float32)
    out2, loss2 = nasnet_forward(image2, targets2, params, max_p_tile=128)
    jax.block_until_ready((out2, loss2))
    ref_out2, ref_loss2 = nasnet_reference(image2, targets2, params)
    assert jnp.allclose(out2, ref_out2, atol=1e-3, rtol=1e-3)
    assert jnp.allclose(loss2, ref_loss2, atol=1e-3, rtol=1e-3)

    # Default (single-tile) path as well.
    out3, loss3 = nasnet_forward(image, targets, params)
    jax.block_until_ready((out3, loss3))
    assert jnp.allclose(out3, ref_out, atol=1e-3, rtol=1e-3)
    assert jnp.allclose(loss3, ref_loss, atol=1e-3, rtol=1e-3)

    print("KERNEL_OK")
</pallas_src>

<mosaic_0001>
module attributes {stable_mosaic.version = 11 : i64} {
  func.func @kernel(%arg0: i32, %arg1: i32, %arg2: memref<1x8x128xbf16, #tpu.memory_space<vmem>>, %arg3: memref<512x8xbf16, #tpu.memory_space<vmem>>, %arg4: memref<512x1xf32, #tpu.memory_space<vmem>>, %arg5: memref<1xf32, #tpu.memory_space<smem>>, %arg6: memref<2xf32, #tpu.memory_space<smem>>, %arg7: memref<1x1x1xf32, #tpu.memory_space<vmem>>, %arg8: memref<1x1x1xf32, #tpu.memory_space<vmem>>, %arg9: memref<512x1xf32, #tpu.memory_space<vmem>>) attributes {dimension_semantics = [#tpu.dimension_semantics<parallel>, #tpu.dimension_semantics<arbitrary>], iteration_bounds = array<i64: 2, 2>, scalar_prefetch = 0 : i64, scratch_operands = 1 : i64, tpu.core_type = #tpu.core_type<tc>, window_params = [{transform_indices = @transform_0, window_bounds = array<i64: 1, 8, 128>}, {pipeline_mode = #tpu.pipeline_mode<synchronous>, transform_indices = @transform_1, window_bounds = array<i64: 512, 8>}, {pipeline_mode = #tpu.pipeline_mode<synchronous>, transform_indices = @transform_2, window_bounds = array<i64: 512, 1>}, {transform_indices = @transform_3, window_bounds = array<i64: 1>}, {transform_indices = @transform_4, window_bounds = array<i64: 2>}, {transform_indices = @transform_5, window_bounds = array<i64: 1, 1, 1>}, {transform_indices = @transform_6, window_bounds = array<i64: 1, 1, 1>}]} {
    %c0_i32 = arith.constant 0 : i32
    %0 = arith.cmpi eq, %arg1, %c0_i32 : i32
    %1 = arith.extui %0 : i1 to i32
    %c0_i32_0 = arith.constant 0 : i32
    %2 = arith.cmpi ne, %1, %c0_i32_0 : i32
    scf.if %2 {
      %cst_12 = arith.constant 0.000000e+00 : f32
      %17 = vector.broadcast %cst_12 : f32 to vector<512x1xf32>
      %c0_13 = arith.constant 0 : index
      %c0_14 = arith.constant 0 : index
      %18 = vector.load %arg9[%c0_13, %c0_14] : memref<512x1xf32, #tpu.memory_space<vmem>>, vector<512x1xf32>
      tpu.vector_store %arg9[%c0_13, %c0_14], %17 {strides = array<i32>} : memref<512x1xf32, #tpu.memory_space<vmem>>, vector<512x1xf32>,
    } else {
    }
    %c0 = arith.constant 0 : index
    %c0_1 = arith.constant 0 : index
    %c0_2 = arith.constant 0 : index
    %3 = vector.load %arg2[%c0, %c0_1, %c0_2] : memref<1x8x128xbf16, #tpu.memory_space<vmem>>, vector<1x8x128xbf16>
    %4 = vector.shape_cast %3 : vector<1x8x128xbf16> to vector<8x128xbf16>
    %c0_3 = arith.constant 0 : index
    %c0_4 = arith.constant 0 : index
    %5 = vector.load %arg3[%c0_3, %c0_4] : memref<512x8xbf16, #tpu.memory_space<vmem>>, vector<512x8xbf16>
    %cst = arith.constant dense<0.000000e+00> : vector<512x128xf32>
    %6 = tpu.matmul %5, %4, %cst {dimension_numbers = #tpu.dot_dimension_numbers<[1], [0], [0], [1], [0, 0, 1, 1], [], []>} : vector<512x8xbf16>, vector<8x128xbf16>, vector<512x128xf32> -> vector<512x128xf32>
    %c0_5 = arith.constant 0 : index
    %c0_6 = arith.constant 0 : index
    %7 = vector.load %arg9[%c0_5, %c0_6] : memref<512x1xf32, #tpu.memory_space<vmem>>, vector<512x1xf32>
    %cst_7 = arith.constant 0.000000e+00 : f32
    %8 = vector.broadcast %cst_7 : f32 to vector<512x128xf32>
    %9 = arith.maximumf %6, %8 : vector<512x128xf32>
    %cst_8 = arith.constant dense<0.000000e+00> : vector<512xf32>
    %10 = vector.multi_reduction <add>, %9, %cst_8 [1] : vector<512x128xf32> to vector<512xf32>
    %11 = vector.shape_cast %10 : vector<512xf32> to vector<512x1xf32>
    %12 = arith.addf %7, %11 : vector<512x1xf32>
    %c0_9 = arith.constant 0 : index
    %c0_10 = arith.constant 0 : index
    %13 = vector.load %arg9[%c0_9, %c0_10] : memref<512x1xf32, #tpu.memory_space<vmem>>, vector<512x1xf32>
    tpu.vector_store %arg9[%c0_9, %c0_10], %12 {strides = array<i32>} : memref<512x1xf32, #tpu.memory_space<vmem>>, vector<512x1xf32>,
    %c1_i32 = arith.constant 1 : i32
    %14 = arith.cmpi eq, %arg1, %c1_i32 : i32
    %15 = arith.extui %14 : i1 to i32
    %c0_i32_11 = arith.constant 0 : i32
    %16 = arith.cmpi ne, %15, %c0_i32_11 : i32
    scf.if %16 {
      %c0_12 = arith.constant 0 : index
      %c0_13 = arith.constant 0 : index
      %17 = vector.load %arg9[%c0_12, %c0_13] : memref<512x1xf32, #tpu.memory_space<vmem>>, vector<512x1xf32>
      %cst_14 = arith.constant 3.906250e-03 : f32
      %18 = vector.broadcast %cst_14 : f32 to vector<512x1xf32>
      %19 = arith.mulf %17, %18 : vector<512x1xf32>
      %c0_15 = arith.constant 0 : index
      %c0_16 = arith.constant 0 : index
      %20 = vector.load %arg4[%c0_15, %c0_16] : memref<512x1xf32, #tpu.memory_space<vmem>>, vector<512x1xf32>
      %21 = arith.mulf %19, %20 : vector<512x1xf32>
      %cst_17 = arith.constant dense<0.000000e+00> : vector<1xf32>
      %22 = vector.multi_reduction <add>, %21, %cst_17 [0] : vector<512x1xf32> to vector<1xf32>
      %23 = vector.shape_cast %22 : vector<1xf32> to vector<1x1xf32>
      %c0_18 = arith.constant 0 : index
      %24 = memref.load %arg5[%c0_18] : memref<1xf32, #tpu.memory_space<smem>>
      %25 = vector.broadcast %24 : f32 to vector<1x1xf32>
      %26 = arith.addf %23, %25 : vector<1x1xf32>
      %c0_19 = arith.constant 0 : index
      %c0_20 = arith.constant 0 : index
      %c0_21 = arith.constant 0 : index
      %27 = vector.load %arg7[%c0_19, %c0_20, %c0_21] : memref<1x1x1xf32, #tpu.memory_space<vmem>>, vector<1x1x1xf32>
      %28 = vector.shape_cast %27 : vector<1x1x1xf32> to vector<1x1xf32>
      %29 = vector.shape_cast %26 : vector<1x1xf32> to vector<1x1x1xf32>
      tpu.vector_store %arg7[%c0_19, %c0_20, %c0_21], %29 {strides = array<i32>} : memref<1x1x1xf32, #tpu.memory_space<vmem>>, vector<1x1x1xf32>,
      %30 = arith.index_cast %arg0 : i32 to index
      %31 = memref.load %arg6[%30] : memref<2xf32, #tpu.memory_space<smem>>
      %cst_22 = arith.constant 0.000000e+00 : f32
      %32 = vector.broadcast %cst_22 : f32 to vector<1x1xf32>
      %33 = arith.maximumf %26, %32 : vector<1x1xf32>
      %34 = vector.broadcast %31 : f32 to vector<1x1xf32>
      %35 = arith.mulf %26, %34 : vector<1x1xf32>
      %36 = arith.subf %33, %35 : vector<1x1xf32>
      %37 = math.absf %26 : vector<1x1xf32>
      %cst_23 = arith.constant 0.000000e+00 : f32
      %38 = vector.broadcast %cst_23 : f32 to vector<1x1xf32>
      %39 = arith.subf %38, %37 : vector<1x1xf32>
      %40 = math.exp %39 : vector<1x1xf32>
      %41 = math.log1p %40 : vector<1x1xf32>
      %42 = arith.addf %36, %41 : vector<1x1xf32>
      %c0_24 = arith.constant 0 : index
      %c0_25 = arith.constant 0 : index
      %c0_26 = arith.constant 0 : index
      %43 = vector.load %arg8[%c0_24, %c0_25, %c0_26] : memref<1x1x1xf32, #tpu.memory_space<vmem>>, vector<1x1x1xf32>
      %44 = vector.shape_cast %43 : vector<1x1x1xf32> to vector<1x1xf32>
      %45 = vector.shape_cast %42 : vector<1x1xf32> to vector<1x1x1xf32>
      tpu.vector_store %arg8[%c0_24, %c0_25, %c0_26], %45 {strides = array<i32>} : memref<1x1x1xf32, #tpu.memory_space<vmem>>, vector<1x1x1xf32>,
    } else {
    }
    return
  }
  func.func @transform_0(%arg0: i32, %arg1: i32) -> (i32, i32, i32) {
    %c0_i32 = arith.constant 0 : i32
    %c0_i32_0 = arith.constant 0 : i32
    return %arg0, %c0_i32, %arg1 : i32, i32, i32
  }
  func.func @transform_1(%arg0: i32, %arg1: i32) -> (i32, i32) {
    %c0_i32 = arith.constant 0 : i32
    %c0_i32_0 = arith.constant 0 : i32
    %c0_i32_1 = arith.constant 0 : i32
    return %c0_i32, %c0_i32_0 : i32, i32
  }
  func.func @transform_2(%arg0: i32, %arg1: i32) -> (i32, i32) {
    %c0_i32 = arith.constant 0 : i32
    %c0_i32_0 = arith.constant 0 : i32
    %c0_i32_1 = arith.constant 0 : i32
    return %c0_i32, %c0_i32_0 : i32, i32
  }
  func.func @transform_3(%arg0: i32, %arg1: i32) -> i32 {
    %c0_i32 = arith.constant 0 : i32
    %c0_i32_0 = arith.constant 0 : i32
    return %c0_i32 : i32
  }
  func.func @transform_4(%arg0: i32, %arg1: i32) -> i32 {
    %c0_i32 = arith.constant 0 : i32
    %c0_i32_0 = arith.constant 0 : i32
    return %c0_i32 : i32
  }
  func.func @transform_5(%arg0: i32, %arg1: i32) -> (i32, i32, i32) {
    %c0_i32 = arith.constant 0 : i32
    %c0_i32_0 = arith.constant 0 : i32
    %c0_i32_1 = arith.constant 0 : i32
    return %arg0, %c0_i32, %c0_i32_0 : i32, i32, i32
  }
  func.func @transform_6(%arg0: i32, %arg1: i32) -> (i32, i32, i32) {
    %c0_i32 = arith.constant 0 : i32
    %c0_i32_0 = arith.constant 0 : i32
    %c0_i32_1 = arith.constant 0 : i32
    return %arg0, %c0_i32, %c0_i32_0 : i32, i32, i32
  }
}

</mosaic_0001>

<bundles_post_ra>
// kernel: tpu_custom_call.1
= control target key start
LH: loop header
LB: loop body
LE: loop exit
PB: predicated region body
PF: predicated region fallthrough
CT: control target
= control target key end

     0   :  { %s3019_s0 = inlined_call_operand.vmem [shape: bf16[2,8,256], index: 0, kind: input, shape index: {}]   ;;  %s3020_s1 = inlined_call_operand.vmem [shape: bf16[512,8], index: 1, kind: input, shape index: {}]   ;;  %s3021_s2 = inlined_call_operand.vmem [shape: f32[512,1], index: 2, kind: input, shape index: {}]   ;;  %s3022_s3 = inlined_call_operand.<no memory space> [shape: f32[1], index: 3, kind: input, shape index: {}]   ;;  %s3023_s4 = inlined_call_operand.vmem [shape: f32[2], index: 4, kind: input, shape index: {}]   ;;  %s3024_s5 = inlined_call_operand.vmem [shape: f32[2,1,1], index: 5, kind: output, shape index: {0}]   ;;  %s3025_s6 = inlined_call_operand.vmem [shape: f32[2,1,1], index: 6, kind: output, shape index: {1}]  }
   0x1   :  { %12 = sst [smem:[#allocation3]] %s3022_s3 }
   0x2   :  { %13 = vsyncpa [#allocation5], 0  ;;  %s2252_s23 = smov 0   ;;  %s2254_s24 = smov 0  }
   0x3   :  { %s2256_s25 = smov 0   ;;  %s2258_s26 = smov 0  }
   0x4   :  { %s2260_s27 = smov 0  }
   0x5 LB: > { %s1885_s3 = sadd.s32 4294967295, %s2210_s27   ;;  %s28_s28 = sadd.s32 1, %s2202_s25  ;;  %s2210_s27 = sphi %s2260_s27, %s19_s27   ;;  %s2206_s26 = sphi %s2258_s26, %s3031_s26   ;;  %s2202_s25 = sphi %s2256_s25, %s3030_s25   ;;  %s2198_s24 = sphi %s2254_s24, %s3029_s24   ;;  %s2194_s23 = sphi %s2252_s23, %s3028_s23  }
   0x6   : > { %p29_p0 = scmp.ge.s32.totalorder %s28_s28, 2  ;;  %s31_s29 = sadd.s32 1, %s2206_s26 }
   0x7   : > { %p1887_p1 = scmp.ge.s32.totalorder %s2210_s27, 1  ;;  %p200_p2 = scmp.lt.s32.totalorder %s2210_s27, 5 }
   0x8   : > { %s3033_s28 = smov (%p29_p0, %s28_s28), 0  ;;  %s3035_s29 = smov (!%p29_p0, %s31_s29), %s2206_s26 }
   0x9   : > { %p2285_p3 = pnand %p1887_p1, %p200_p2  ;;  %p33_p4 = scmp.ge.s32.totalorder %s3035_s29, 2 }
   0xa   : > { %p2289_p5 = scmp.eq.s32.totalorder %s1885_s3, 0  ;;  %s222_s10 = sshll.u32 %s3023_s4, 4  ;;  %s223_s10 = int_to_ptr.vmem [resolvable:$true] %s222_s10 }
   0xb   : > { %p2069_p6 = pneg %p2285_p3  ;;  %s3037_s29 = smov (%p33_p4, %s3035_s29), 0 }
   0xc   : > { %s2153_s11 = scalar_lea.vmem %s223_s10, 16  ;;  %p2161_p12 = scmp.lt.s32.totalorder %s223_s10, %s223_s10 }
   0xd   : > { %p2070_p7 = pnand %p2289_p5, %p2069_p6  ;;  %p2154_p8 = scmp.ne.s32.totalorder %s223_s10, %s2153_s11 }
   0xe   : > { %p2162_p13 = scmp.lt.s32.totalorder %s2153_s11, %s2153_s11 }
   0xf   : > { %p2155_p9 = pneg %p2070_p7 }
  0x10   : > { %p2163_p0 = por %p2162_p13, %p2161_p12 }
  0x11   : > { %p2156_p10 = pnand %p2155_p9, %p2154_p8 }
  0x13   : > { %p2157_p11 = pneg %p2156_p10 }
  0x15   : > { %p2164_p1 = pnand %p2163_p0, %p2157_p11 }
  0x17   : > { %2167 = shalt.err (!%p2164_p1)
}
  0x18   : > { %s2212_s12 = smov [#allocation4]   ;;  %246 = sbr.rel (%p2285_p3) target bundleno = 723 (0x2d3), region = 40 }
  0x19   : > { %2072 = dma.vmem_to_smem (!%p2070_p7), %s223_s10, 16, %s2212_s12, [#allocation5]  }
  0x1f   : > { %2189 = dma.done.wait (%p2289_p5), [#allocation5], 16  }
  0x20   : > { %2191 = vsyncadd (%p2289_p5), [#allocation5], 4294967280 }
  0x21   : > { %252 = sfence }
  0x22   : > { %p281_p2 = scmp.lt.s32.totalorder %s2198_s24, 1  ;;  %p283_p4 = scmp.lt.s32.totalorder %s2194_s23, 1 }
  0x23   : > { %p1894_p3 = scmp.ne.s32.totalorder %s2194_s23, 0 }
  0x24   : > { %s2311_s13 = scalar_select %p281_p2, %s2198_s24, 1 }
  0x25   : > { %s284_s14 = scalar_select %p283_p4, %s2194_s23, 1 }
  0x26   : > { %s1892_s15 = sshll.u32 %s2311_s13, 1  ;;  %s291_s18 = scalar_lea.vmem %s3024_s5, %s2311_s13  ;;  %vm300_vm0 = vcmask (!%p1894_p3), 7168   ;;  %v2213_v0 = vmov (!%p1894_p3), 0.0  }
  0x27   : > { %s286_s19 = sadd.s32 %s1892_s15, %s284_s14  ;;  %s294_s22 = scalar_lea.vmem %s3025_s6, %s2311_s13  ;;  %301 = vst.msk [vmem:[#allocation2] sm:$0xff] (!%p1894_p3), %vm300_vm0, %v2213_v0  ;;  %302 = vst.msk [vmem:[#allocation2 + $0x8] sm:$0xff] (!%p1894_p3), %vm300_vm0, %v2213_v0 }
  0x28   : > { %s1893_s3 = sshll.u32 %s286_s19, 2  ;;  %299 = sbr.rel (%p1894_p3) target bundleno = 71 (0x47), region = 48  ;;  %303 = vst.msk [vmem:[#allocation2 + $0x10] sm:$0xff] (!%p1894_p3), %vm300_vm0, %v2213_v0  ;;  %304 = vst.msk [vmem:[#allocation2 + $0x18] sm:$0xff] (!%p1894_p3), %vm300_vm0, %v2213_v0 }
  0x29   : > { %s2326_s8 = scalar_lea.vmem %s3019_s0, %s1893_s3  ;;  %305 = vst.msk [vmem:[#allocation2 + $0x20] sm:$0xff] (!%p1894_p3), %vm300_vm0, %v2213_v0  ;;  %306 = vst.msk [vmem:[#allocation2 + $0x28] sm:$0xff] (!%p1894_p3), %vm300_vm0, %v2213_v0 }
  0x2a   : > { %307 = vst.msk [vmem:[#allocation2 + $0x30] sm:$0xff] (!%p1894_p3), %vm300_vm0, %v2213_v0  ;;  %308 = vst.msk [vmem:[#allocation2 + $0x38] sm:$0xff] (!%p1894_p3), %vm300_vm0, %v2213_v0 }
  0x2b   : > { %309 = vst.msk [vmem:[#allocation2 + $0x40] sm:$0xff] (!%p1894_p3), %vm300_vm0, %v2213_v0  ;;  %310 = vst.msk [vmem:[#allocation2 + $0x48] sm:$0xff] (!%p1894_p3), %vm300_vm0, %v2213_v0 }
  0x2c   : > { %311 = vst.msk [vmem:[#allocation2 + $0x50] sm:$0xff] (!%p1894_p3), %vm300_vm0, %v2213_v0  ;;  %312 = vst.msk [vmem:[#allocation2 + $0x58] sm:$0xff] (!%p1894_p3), %vm300_vm0, %v2213_v0 }
  0x2d   : > { %313 = vst.msk [vmem:[#allocation2 + $0x60] sm:$0xff] (!%p1894_p3), %vm300_vm0, %v2213_v0  ;;  %314 = vst.msk [vmem:[#allocation2 + $0x68] sm:$0xff] (!%p1894_p3), %vm300_vm0, %v2213_v0 }
  0x2e   : > { %315 = vst.msk [vmem:[#allocation2 + $0x70] sm:$0xff] (!%p1894_p3), %vm300_vm0, %v2213_v0  ;;  %316 = vst.msk [vmem:[#allocation2 + $0x78] sm:$0xff] (!%p1894_p3), %vm300_vm0, %v2213_v0 }
  0x2f   : > { %317 = vst.msk [vmem:[#allocation2 + $0x80] sm:$0xff] %vm300_vm0, %v2213_v0  ;;  %318 = vst.msk [vmem:[#allocation2 + $0x88] sm:$0xff] %vm300_vm0, %v2213_v0 }
  0x30   : > { %319 = vst.msk [vmem:[#allocation2 + $0x90] sm:$0xff] %vm300_vm0, %v2213_v0  ;;  %320 = vst.msk [vmem:[#allocation2 + $0x98] sm:$0xff] %vm300_vm0, %v2213_v0 }
  0x31   : > { %321 = vst.msk [vmem:[#allocation2 + $0xa0] sm:$0xff] %vm300_vm0, %v2213_v0  ;;  %322 = vst.msk [vmem:[#allocation2 + $0xa8] sm:$0xff] %vm300_vm0, %v2213_v0 }
  0x32   : > { %323 = vst.msk [vmem:[#allocation2 + $0xb0] sm:$0xff] %vm300_vm0, %v2213_v0  ;;  %324 = vst.msk [vmem:[#allocation2 + $0xb8] sm:$0xff] %vm300_vm0, %v2213_v0 }
  0x33   : > { %325 = vst.msk [vmem:[#allocation2 + $0xc0] sm:$0xff] %vm300_vm0, %v2213_v0  ;;  %326 = vst.msk [vmem:[#allocation2 + $0xc8] sm:$0xff] %vm300_vm0, %v2213_v0 }
  0x34   : > { %327 = vst.msk [vmem:[#allocation2 + $0xd0] sm:$0xff] %vm300_vm0, %v2213_v0  ;;  %328 = vst.msk [vmem:[#allocation2 + $0xd8] sm:$0xff] %vm300_vm0, %v2213_v0 }
  0x35   : > { %329 = vst.msk [vmem:[#allocation2 + $0xe0] sm:$0xff] %vm300_vm0, %v2213_v0  ;;  %330 = vst.msk [vmem:[#allocation2 + $0xe8] sm:$0xff] %vm300_vm0, %v2213_v0 }
  0x36   : > { %331 = vst.msk [vmem:[#allocation2 + $0xf0] sm:$0xff] %vm300_vm0, %v2213_v0  ;;  %332 = vst.msk [vmem:[#allocation2 + $0xf8] sm:$0xff] %vm300_vm0, %v2213_v0 }
  0x37   : > { %333 = vst.msk [vmem:[#allocation2 + $0x100] sm:$0xff] %vm300_vm0, %v2213_v0  ;;  %334 = vst.msk [vmem:[#allocation2 + $0x108] sm:$0xff] %vm300_vm0, %v2213_v0 }
  0x38   : > { %335 = vst.msk [vmem:[#allocation2 + $0x110] sm:$0xff] %vm300_vm0, %v2213_v0  ;;  %336 = vst.msk [vmem:[#allocation2 + $0x118] sm:$0xff] %vm300_vm0, %v2213_v0 }
  0x39   : > { %337 = vst.msk [vmem:[#allocation2 + $0x120] sm:$0xff] %vm300_vm0, %v2213_v0  ;;  %338 = vst.msk [vmem:[#allocation2 + $0x128] sm:$0xff] %vm300_vm0, %v2213_v0 }
  0x3a   : > { %339 = vst.msk [vmem:[#allocation2 + $0x130] sm:$0xff] %vm300_vm0, %v2213_v0  ;;  %340 = vst.msk [vmem:[#allocation2 + $0x138] sm:$0xff] %vm300_vm0, %v2213_v0 }
  0x3b   : > { %341 = vst.msk [vmem:[#allocation2 + $0x140] sm:$0xff] %vm300_vm0, %v2213_v0  ;;  %342 = vst.msk [vmem:[#allocation2 + $0x148] sm:$0xff] %vm300_vm0, %v2213_v0 }
  0x3c   : > { %343 = vst.msk [vmem:[#allocation2 + $0x150] sm:$0xff] %vm300_vm0, %v2213_v0  ;;  %344 = vst.msk [vmem:[#allocation2 + $0x158] sm:$0xff] %vm300_vm0, %v2213_v0 }
  0x3d   : > { %345 = vst.msk [vmem:[#allocation2 + $0x160] sm:$0xff] %vm300_vm0, %v2213_v0  ;;  %346 = vst.msk [vmem:[#allocation2 + $0x168] sm:$0xff] %vm300_vm0, %v2213_v0 }
  0x3e   : > { %347 = vst.msk [vmem:[#allocation2 + $0x170] sm:$0xff] %vm300_vm0, %v2213_v0  ;;  %348 = vst.msk [vmem:[#allocation2 + $0x178] sm:$0xff] %vm300_vm0, %v2213_v0 }
  0x3f   : > { %349 = vst.msk [vmem:[#allocation2 + $0x180] sm:$0xff] %vm300_vm0, %v2213_v0  ;;  %350 = vst.msk [vmem:[#allocation2 + $0x188] sm:$0xff] %vm300_vm0, %v2213_v0 }
  0x40   : > { %351 = vst.msk [vmem:[#allocation2 + $0x190] sm:$0xff] %vm300_vm0, %v2213_v0  ;;  %352 = vst.msk [vmem:[#allocation2 + $0x198] sm:$0xff] %vm300_vm0, %v2213_v0 }
  0x41   : > { %353 = vst.msk [vmem:[#allocation2 + $0x1a0] sm:$0xff] %vm300_vm0, %v2213_v0  ;;  %354 = vst.msk [vmem:[#allocation2 + $0x1a8] sm:$0xff] %vm300_vm0, %v2213_v0 }
  0x42   : > { %355 = vst.msk [vmem:[#allocation2 + $0x1b0] sm:$0xff] %vm300_vm0, %v2213_v0  ;;  %356 = vst.msk [vmem:[#allocation2 + $0x1b8] sm:$0xff] %vm300_vm0, %v2213_v0 }
  0x43   : > { %357 = vst.msk [vmem:[#allocation2 + $0x1c0] sm:$0xff] %vm300_vm0, %v2213_v0  ;;  %358 = vst.msk [vmem:[#allocation2 + $0x1c8] sm:$0xff] %vm300_vm0, %v2213_v0 }
  0x44   : > { %359 = vst.msk [vmem:[#allocation2 + $0x1d0] sm:$0xff] %vm300_vm0, %v2213_v0  ;;  %360 = vst.msk [vmem:[#allocation2 + $0x1d8] sm:$0xff] %vm300_vm0, %v2213_v0 }
  0x45   : > { %361 = vst.msk [vmem:[#allocation2 + $0x1e0] sm:$0xff] %vm300_vm0, %v2213_v0  ;;  %362 = vst.msk [vmem:[#allocation2 + $0x1e8] sm:$0xff] %vm300_vm0, %v2213_v0 }
  0x46   : > { %363 = vst.msk [vmem:[#allocation2 + $0x1f0] sm:$0xff] %vm300_vm0, %v2213_v0  ;;  %364 = vst.msk [vmem:[#allocation2 + $0x1f8] sm:$0xff] %vm300_vm0, %v2213_v0 }
  0x47 PF: > { %v365_v1 = vld [vmem:[%s2326_s8] sm:$0xf]  ;;  %vm687_vm1 = vcmask 1043456   ;;  %vm590_vm2 = vcmask 64512   ;;  %v2119_v5 = vld [vmem:[%s3020_s1 + $0x8] sm:$0xff]   ;;  %v2121_v7 = vld [vmem:[%s3020_s1 + $0x10] sm:$0xff]  }
  0x48   : > { %v2117_v2 = vld [vmem:[%s3020_s1] sm:$0xff]   ;;  %2063 = vmatprep.subr.msk.bf16.mxu0 %vm687_vm1, %v365_v1  ;;  %2064 = vmatprep.subr.msk.bf16.mxu1 %vm687_vm1, %v365_v1  ;;  %v689_v3 = vsel %vm687_vm1, %v365_v1, 0  ;;  %v2120_v6 = vld [vmem:[%s3020_s1 + $0x88] sm:$0xff]   ;;  %v2123_v8 = vld [vmem:[%s3020_s1 + $0x90] sm:$0xff]   ;;  %vm1300_vm3 = vcmask 7168   ;;  %p1959_p5 = scmp.ne.s32.totalorder %s2194_s23, 1 }
  0x49   : > { %1996 = vmatpush3.bf16.msra.mxu0 %v689_v3  ;;  %2062 = vmatpush3.bf16.msra.mxu1 %v689_v3  ;;  %v2118_v4 = vld [vmem:[%s3020_s1 + $0x80] sm:$0xff]   ;;  %v2122_v9 = vld [vmem:[%s3020_s1 + $0x18] sm:$0xff]   ;;  %v2126_v13 = vld [vmem:[%s3020_s1 + $0x28] sm:$0xff]   ;;  %s1758_s14 = sld [smem:[#allocation3]] (!%p1959_p5)  ;;  %vm1761_vm4 = vcmask (!%p1959_p5), 0  }
  0x4a   : > { %1997 = vmatprep.mubr.msk.bf16.mxu0 %vm590_vm2, %v2117_v2  ;;  %2029 = vmatprep.mubr.msk.bf16.mxu1 %vm590_vm2, %v2118_v4  ;;  %v2124_v10 = vld [vmem:[%s3020_s1 + $0x98] sm:$0xff]   ;;  %v2125_v11 = vld [vmem:[%s3020_s1 + $0x20] sm:$0xff]   ;;  %v2128_v14 = vld [vmem:[%s3020_s1 + $0xa8] sm:$0xff]   ;;  %s1763_s17 = sld [smem:[#allocation4 + %s2198_s24]] (!%p1959_p5) }
  0x4b   : > { %v2127_v12 = vld [vmem:[%s3020_s1 + $0xa0] sm:$0xff]   ;;  %v2129_v15 = vld [vmem:[%s3020_s1 + $0x30] sm:$0xff]   ;;  %v2130_v17 = vld [vmem:[%s3020_s1 + $0x38] sm:$0xff]  }
  0x4c   : > { %1998 = vmatmul.mubr.msk.bf16.vlgmr.msra.gmra.mrb[0].mxu0 %vm590_vm2, %v2119_v5  ;;  %2030 = vmatmul.mubr.msk.bf16.vlgmr.msra.gmra.mrb[0].mxu1 %vm590_vm2, %v2120_v6  ;;  %v2131_v16 = vld [vmem:[%s3020_s1 + $0xb0] sm:$0xff]   ;;  %v2132_v18 = vld [vmem:[%s3020_s1 + $0xb8] sm:$0xff]   ;;  %v2133_v19 = vld [vmem:[%s3020_s1 + $0x40] sm:$0xff]  }
  0x4d   : > { %2001 = vmatprep.mubr.msk.bf16.mxu0 %vm590_vm2, %v2121_v7  ;;  %2033 = vmatprep.mubr.msk.bf16.mxu1 %vm590_vm2, %v2123_v8  ;;  %v2135_v20 = vld [vmem:[%s3020_s1 + $0xc0] sm:$0xff]   ;;  %v2134_v21 = vld [vmem:[%s3020_s1 + $0x48] sm:$0xff]   ;;  %v2137_v23 = vld [vmem:[%s3020_s1 + $0x50] sm:$0xff]  }
  0x4e   : > { %v2136_v22 = vld [vmem:[%s3020_s1 + $0xc8] sm:$0xff]   ;;  %v2139_v24 = vld [vmem:[%s3020_s1 + $0xd0] sm:$0xff]   ;;  %v2138_v25 = vld [vmem:[%s3020_s1 + $0x58] sm:$0xff]  }
  0x4f   : > { %v2140_v26 = vld [vmem:[%s3020_s1 + $0xd8] sm:$0xff]   ;;  %v2141_v27 = vld [vmem:[%s3020_s1 + $0x60] sm:$0xff]   ;;  %v2142_v29 = vld [vmem:[%s3020_s1 + $0x68] sm:$0xff]  }
  0x50   : > { %v2143_v28 = vld [vmem:[%s3020_s1 + $0xe0] sm:$0xff]   ;;  %v2144_v30 = vld [vmem:[%s3020_s1 + $0xe8] sm:$0xff]   ;;  %v2145_v31 = vld [vmem:[%s3020_s1 + $0x70] sm:$0xff]  }
  0x51   : > { %v2147_v32 = vld [vmem:[%s3020_s1 + $0xf0] sm:$0xff]   ;;  %v2146_v33 = vld [vmem:[%s3020_s1 + $0x78] sm:$0xff]  }
  0x52   : > { %v2148_v34 = vld [vmem:[%s3020_s1 + $0xf8] sm:$0xff]  }
  0x54   : > { %2002 = vmatmul.mubr.msk.bf16.gmra.mrb[4].mxu0 %vm590_vm2, %v2122_v9  ;;  %2034 = vmatmul.mubr.msk.bf16.gmra.mrb[4].mxu1 %vm590_vm2, %v2124_v10 }
  0x55   : > { %2005 = vmatprep.mubr.msk.bf16.mxu0 %vm590_vm2, %v2125_v11  ;;  %2037 = vmatprep.mubr.msk.bf16.mxu1 %vm590_vm2, %v2127_v12 }
  0x5c   : > { %2006 = vmatmul.mubr.msk.bf16.gmra.mrb[8].mxu0 %vm590_vm2, %v2126_v13  ;;  %2038 = vmatmul.mubr.msk.bf16.gmra.mrb[8].mxu1 %vm590_vm2, %v2128_v14 }
  0x5d   : > { %2009 = vmatprep.mubr.msk.bf16.mxu0 %vm590_vm2, %v2129_v15  ;;  %2041 = vmatprep.mubr.msk.bf16.mxu1 %vm590_vm2, %v2131_v16 }
  0x64   : > { %2010 = vmatmul.mubr.msk.bf16.gmra.mrb[12].mxu0 %vm590_vm2, %v2130_v17  ;;  %2042 = vmatmul.mubr.msk.bf16.gmra.mrb[12].mxu1 %vm590_vm2, %v2132_v18 }
  0x65   : > { %2013 = vmatprep.mubr.msk.bf16.mxu0 %vm590_vm2, %v2133_v19  ;;  %2045 = vmatprep.mubr.msk.bf16.mxu1 %vm590_vm2, %v2135_v20 }
  0x6c   : > { %2014 = vmatmul.mubr.msk.bf16.gmra.mrb[16].mxu0 %vm590_vm2, %v2134_v21  ;;  %2046 = vmatmul.mubr.msk.bf16.gmra.mrb[16].mxu1 %vm590_vm2, %v2136_v22 }
  0x6d   : > { %2017 = vmatprep.mubr.msk.bf16.mxu0 %vm590_vm2, %v2137_v23  ;;  %2049 = vmatprep.mubr.msk.bf16.mxu1 %vm590_vm2, %v2139_v24 }
  0x74   : > { %2018 = vmatmul.mubr.msk.bf16.gmra.mrb[20].mxu0 %vm590_vm2, %v2138_v25  ;;  %2050 = vmatmul.mubr.msk.bf16.gmra.mrb[20].mxu1 %vm590_vm2, %v2140_v26 }
  0x75   : > { %2021 = vmatprep.mubr.msk.bf16.mxu0 %vm590_vm2, %v2141_v27  ;;  %2053 = vmatprep.mubr.msk.bf16.mxu1 %vm590_vm2, %v2143_v28 }
  0x7c   : > { %2022 = vmatmul.mubr.msk.bf16.gmra.mrb[24].mxu0 %vm590_vm2, %v2142_v29  ;;  %2054 = vmatmul.mubr.msk.bf16.gmra.mrb[24].mxu1 %vm590_vm2, %v2144_v30 }
  0x7d   : > { %2025 = vmatprep.mubr.msk.bf16.mxu0 %vm590_vm2, %v2145_v31  ;;  %2057 = vmatprep.mubr.msk.bf16.mxu1 %vm590_vm2, %v2147_v32 }
  0x84   : > { %2026 = vmatmul.mubr.msk.bf16.gmra.mrb[28].mxu0 %vm590_vm2, %v2146_v33  ;;  %2058 = vmatmul.mubr.msk.bf16.gmra.mrb[28].mxu1 %vm590_vm2, %v2148_v34 }
 0x11f   : > { %v1999_v35 = vpop.f32.mrb[0].mxu0  ;;  %v2031_v36 = vpop.f32.mrb[0].mxu1 }
 0x120   : > { %v725_v37 = vpop.f32.mrb[1].mxu0  ;;  %v1046_v38 = vmax.f32 %v1999_v35, 0.0  ;;  %v853_v39 = vpop.f32.mrb[1].mxu1  ;;  %v1078_v41 = vmax.f32 %v2031_v36, 0.0 }
 0x121   : > { %v2000_v40 = vpop.f32.mrb[2].mxu0  ;;  %v2032_v42 = vpop.f32.mrb[2].mxu1  ;;  %v1044_v46 = vmax.f32 %v725_v37, 0.0  ;;  %v1076_v51 = vmax.f32 %v853_v39, 0.0 }
 0x122   : > { %1112 = vadd.xlane.f32.xlu1 %v1046_v38  ;;  %v728_v43 = vpop.f32.mrb[3].mxu0  ;;  %1176 = vadd.xlane.f32.xlu0 %v1078_v41  ;;  %v856_v44 = vpop.f32.mrb[3].mxu1  ;;  %v1047_v45 = vmax.f32 %v2000_v40, 0.0  ;;  %v1079_v48 = vmax.f32 %v2032_v42, 0.0 }
 0x123   : > { %v1077_v57 = vmax.f32 %v856_v44, 0.0  ;;  %v1045_v58 = vmax.f32 %v728_v43, 0.0 }
 0x126   : > { %1114 = vadd.xlane.f32.xlu1 %v1047_v45  ;;  %1108 = vadd.xlane.f32.xlu0 %v1044_v46 }
 0x127   : > { %v2003_v47 = vpop.f32.mrb[4].mxu0  ;;  %v2035_v50 = vpop.f32.mrb[4].mxu1 }
 0x128   : > { %v741_v49 = vpop.f32.mrb[5].mxu0  ;;  %v869_v53 = vpop.f32.mrb[5].mxu1  ;;  %v1050_v63 = vmax.f32 %v2003_v47, 0.0  ;;  %v1082_v6 = vmax.f32 %v2035_v50, 0.0 }
 0x129   : > { %v2004_v52 = vpop.f32.mrb[6].mxu0  ;;  %v2036_v55 = vpop.f32.mrb[6].mxu1  ;;  %v1048_v11 = vmax.f32 %v741_v49, 0.0  ;;  %v1080_v18 = vmax.f32 %v869_v53, 0.0 }
 0x12a   : > { %1178 = vadd.xlane.f32.xlu1 %v1079_v48  ;;  %v744_v54 = vpop.f32.mrb[7].mxu0  ;;  %1172 = vadd.xlane.f32.xlu0 %v1076_v51  ;;  %v872_v56 = vpop.f32.mrb[7].mxu1  ;;  %v1051_v60 = vmax.f32 %v2004_v52, 0.0  ;;  %v1083_v5 = vmax.f32 %v2036_v55, 0.0 }
 0x12b   : > { %v1049_v8 = vmax.f32 %v744_v54, 0.0  ;;  %v1081_v17 = vmax.f32 %v872_v56, 0.0 }
 0x12e   : > { %1174 = vadd.xlane.f32.xlu1 %v1077_v57  ;;  %1110 = vadd.xlane.f32.xlu0 %v1045_v58 }
 0x12f   : > { %v2007_v59 = vpop.f32.mrb[8].mxu0  ;;  %v2039_v62 = vpop.f32.mrb[8].mxu1 }
 0x130   : > { %v757_v61 = vpop.f32.mrb[9].mxu0  ;;  %v885_v1 = vpop.f32.mrb[9].mxu1  ;;  %v1054_v23 = vmax.f32 %v2007_v59, 0.0  ;;  %v1086_v30 = vmax.f32 %v2039_v62, 0.0 }
 0x131   : > { %v2008_v0 = vpop.f32.mrb[10].mxu0  ;;  %v2040_v3 = vpop.f32.mrb[10].mxu1  ;;  %v1052_v35 = vmax.f32 %v757_v61, 0.0  ;;  %v1084_v42 = vmax.f32 %v885_v1, 0.0 }
 0x132   : > { %1122 = vadd.xlane.f32.xlu1 %v1051_v60  ;;  %v760_v2 = vpop.f32.mrb[11].mxu0  ;;  %1120 = vadd.xlane.f32.xlu0 %v1050_v63  ;;  %v888_v4 = vpop.f32.mrb[11].mxu1  ;;  %v1055_v20 = vmax.f32 %v2008_v0, 0.0  ;;  %v1087_v29 = vmax.f32 %v2040_v3, 0.0 }
 0x133   : > { %v1053_v32 = vmax.f32 %v760_v2, 0.0  ;;  %v1085_v41 = vmax.f32 %v888_v4, 0.0 }
 0x136   : > { %1186 = vadd.xlane.f32.xlu1 %v1083_v5  ;;  %1184 = vadd.xlane.f32.xlu0 %v1082_v6 }
 0x137   : > { %v2011_v7 = vpop.f32.mrb[12].mxu0  ;;  %v2043_v10 = vpop.f32.mrb[12].mxu1 }
 0x138   : > { %v2586_v9 = vpop.f32.mrb[13].mxu0  ;;  %v2588_v13 = vpop.f32.mrb[13].mxu1  ;;  %v1058_v47 = vmax.f32 %v2011_v7, 0.0  ;;  %v1090_v54 = vmax.f32 %v2043_v10, 0.0 }
 0x139   : > { %v2012_v12 = vpop.f32.mrb[14].mxu0  ;;  %v2044_v15 = vpop.f32.mrb[14].mxu1  ;;  %v1056_v59 = vmax.f32 %v2586_v9, 0.0  ;;  %v1088_v2 = vmax.f32 %v2588_v13, 0.0 }
 0x13a   : > { %1118 = vadd.xlane.f32.xlu1 %v1049_v8  ;;  %v2590_v14 = vpop.f32.mrb[15].mxu0  ;;  %1116 = vadd.xlane.f32.xlu0 %v1048_v11  ;;  %v2592_v16 = vpop.f32.mrb[15].mxu1  ;;  %v1059_v44 = vmax.f32 %v2012_v12, 0.0  ;;  %v1091_v53 = vmax.f32 %v2044_v15, 0.0 }
 0x13b   : > { %v1057_v56 = vmax.f32 %v2590_v14, 0.0  ;;  %v1089_v1 = vmax.f32 %v2592_v16, 0.0 }
 0x13e   : > { %1182 = vadd.xlane.f32.xlu1 %v1081_v17  ;;  %1180 = vadd.xlane.f32.xlu0 %v1080_v18 }
 0x13f   : > { %v2594_v19 = vpop.f32.mrb[16].mxu0  ;;  %v2598_v22 = vpop.f32.mrb[16].mxu1 }
 0x140   : > { %v2596_v21 = vpop.f32.mrb[17].mxu0  ;;  %v2600_v25 = vpop.f32.mrb[17].mxu1  ;;  %v1062_v4 = vmax.f32 %v2594_v19, 0.0  ;;  %v1094_v6 = vmax.f32 %v2598_v22, 0.0 }
 0x141   : > { %v2016_v24 = vpop.f32.mrb[18].mxu0  ;;  %v2048_v27 = vpop.f32.mrb[18].mxu1  ;;  %v1060_v8 = vmax.f32 %v2596_v21, 0.0  ;;  %v1092_v10 = vmax.f32 %v2600_v25, 0.0 }
 0x142   : > { %1130 = vadd.xlane.f32.xlu1 %v1055_v20  ;;  %v2602_v26 = vpop.f32.mrb[19].mxu0  ;;  %1128 = vadd.xlane.f32.xlu0 %v1054_v23  ;;  %v2604_v28 = vpop.f32.mrb[19].mxu1  ;;  %v1063_v3 = vmax.f32 %v2016_v24, 0.0  ;;  %v1095_v5 = vmax.f32 %v2048_v27, 0.0 }
 0x143   : > { %v1061_v7 = vmax.f32 %v2602_v26, 0.0  ;;  %v1093_v9 = vmax.f32 %v2604_v28, 0.0 }
 0x146   : > { %1194 = vadd.xlane.f32.xlu1 %v1087_v29  ;;  %1192 = vadd.xlane.f32.xlu0 %v1086_v30 }
 0x147   : > { %v2606_v31 = vpop.f32.mrb[20].mxu0  ;;  %v2610_v34 = vpop.f32.mrb[20].mxu1 }
 0x148   : > { %v2608_v33 = vpop.f32.mrb[21].mxu0  ;;  %v2612_v37 = vpop.f32.mrb[21].mxu1  ;;  %v1066_v12 = vmax.f32 %v2606_v31, 0.0  ;;  %v1098_v14 = vmax.f32 %v2610_v34, 0.0 }
 0x149   : > { %v2020_v36 = vpop.f32.mrb[22].mxu0  ;;  %v2052_v39 = vpop.f32.mrb[22].mxu1  ;;  %v1064_v16 = vmax.f32 %v2608_v33, 0.0  ;;  %v1096_v18 = vmax.f32 %v2612_v37, 0.0 }
 0x14a   : > { %1126 = vadd.xlane.f32.xlu1 %v1053_v32  ;;  %v2614_v38 = vpop.f32.mrb[23].mxu0  ;;  %1124 = vadd.xlane.f32.xlu0 %v1052_v35  ;;  %v2616_v40 = vpop.f32.mrb[23].mxu1  ;;  %v1067_v11 = vmax.f32 %v2020_v36, 0.0  ;;  %v1099_v13 = vmax.f32 %v2052_v39, 0.0  ;;  %v982_v35 = vld [vmem:[#allocation2 + $0x10] sm:$0xff] }
 0x14b   : > { %v1065_v15 = vmax.f32 %v2614_v38, 0.0  ;;  %v1097_v17 = vmax.f32 %v2616_v40, 0.0  ;;  %v1014_v36 = vld [vmem:[#allocation2 + $0x110] sm:$0xff] }
 0x14e   : > { %1190 = vadd.xlane.f32.xlu1 %v1085_v41  ;;  %1188 = vadd.xlane.f32.xlu0 %v1084_v42  ;;  %v983_v41 = vld [vmem:[#allocation2 + $0x18] sm:$0xff]  ;;  %v980_v42 = vld [vmem:[#allocation2] sm:$0xff] }
 0x14f   : > { %v2618_v43 = vpop.f32.mrb[24].mxu0  ;;  %v2622_v46 = vpop.f32.mrb[24].mxu1 }
 0x150   : > { %v2620_v45 = vpop.f32.mrb[25].mxu0  ;;  %v2624_v49 = vpop.f32.mrb[25].mxu1  ;;  %v1070_v20 = vmax.f32 %v2618_v43, 0.0  ;;  %v1102_v22 = vmax.f32 %v2622_v46, 0.0 }
 0x151   : > { %v2024_v48 = vpop.f32.mrb[26].mxu0  ;;  %v2056_v51 = vpop.f32.mrb[26].mxu1  ;;  %v1068_v24 = vmax.f32 %v2620_v45, 0.0  ;;  %v1100_v26 = vmax.f32 %v2624_v49, 0.0 }
 0x152   : > { %1138 = vadd.xlane.f32.xlu1 %v1059_v44  ;;  %v2626_v50 = vpop.f32.mrb[27].mxu0  ;;  %1136 = vadd.xlane.f32.xlu0 %v1058_v47  ;;  %v2628_v52 = vpop.f32.mrb[27].mxu1  ;;  %v1071_v19 = vmax.f32 %v2024_v48, 0.0  ;;  %v1103_v21 = vmax.f32 %v2056_v51, 0.0  ;;  %v1015_v47 = vld [vmem:[#allocation2 + $0x118] sm:$0xff]  ;;  %v1012_v48 = vld [vmem:[#allocation2 + $0x100] sm:$0xff] }
 0x153   : > { %v1069_v23 = vmax.f32 %v2626_v50, 0.0  ;;  %v1101_v25 = vmax.f32 %v2628_v52, 0.0 }
 0x156   : > { %1202 = vadd.xlane.f32.xlu1 %v1091_v53  ;;  %1200 = vadd.xlane.f32.xlu0 %v1090_v54  ;;  %v1013_v53 = vld [vmem:[#allocation2 + $0x108] sm:$0xff] }
 0x157   : > { %v2630_v55 = vpop.f32.mrb[28].mxu0  ;;  %v2635_v58 = vpop.f32.mrb[28].mxu1  ;;  %v981_v54 = vld [vmem:[#allocation2 + $0x8] sm:$0xff] }
 0x158   : > { %v2633_v57 = vpop.f32.mrb[29].mxu0  ;;  %v2638_v61 = vpop.f32.mrb[29].mxu1  ;;  %v1074_v28 = vmax.f32 %v2630_v55, 0.0  ;;  %v1106_v34 = vmax.f32 %v2635_v58, 0.0 }
 0x159   : > { %v2028_v60 = vpop.f32.mrb[30].mxu0  ;;  %v2640_v63 = vpop.f32.mrb[30].mxu1  ;;  %v1072_v30 = vmax.f32 %v2633_v57, 0.0  ;;  %v1104_v32 = vmax.f32 %v2638_v61, 0.0 }
 0x15a   : > { %1134 = vadd.xlane.f32.xlu1 %v1057_v56  ;;  %v840_v62 = vpop.f32.mrb[31].mxu0  ;;  %1132 = vadd.xlane.f32.xlu0 %v1056_v59  ;;  %v2642_v0 = vpop.f32.mrb[31].mxu1  ;;  %v1075_v27 = vmax.f32 %v2028_v60, 0.0  ;;  %v1107_v33 = vmax.f32 %v2640_v63, 0.0  ;;  %v987_v59 = vld [vmem:[#allocation2 + $0x38] sm:$0xff]  ;;  %v986_v60 = vld [vmem:[#allocation2 + $0x30] sm:$0xff] }
 0x15b   : > { %v1073_v29 = vmax.f32 %v840_v62, 0.0  ;;  %v1105_v31 = vmax.f32 %v2642_v0, 0.0 }
 0x15e   : > { %1198 = vadd.xlane.f32.xlu1 %v1089_v1  ;;  %1196 = vadd.xlane.f32.xlu0 %v1088_v2  ;;  %v1019_v1 = vld [vmem:[#allocation2 + $0x138] sm:$0xff]  ;;  %v1018_v2 = vld [vmem:[#allocation2 + $0x130] sm:$0xff] }
 0x162   : > { %1146 = vadd.xlane.f32.xlu1 %v1063_v3  ;;  %1144 = vadd.xlane.f32.xlu0 %v1062_v4 }
 0x166   : > { %1210 = vadd.xlane.f32.xlu1 %v1095_v5  ;;  %1208 = vadd.xlane.f32.xlu0 %v1094_v6 }
 0x16a   : > { %1142 = vadd.xlane.f32.xlu1 %v1061_v7  ;;  %1140 = vadd.xlane.f32.xlu0 %v1060_v8  ;;  %v985_v7 = vld [vmem:[#allocation2 + $0x28] sm:$0xff]  ;;  %v984_v8 = vld [vmem:[#allocation2 + $0x20] sm:$0xff] }
 0x16e   : > { %1206 = vadd.xlane.f32.xlu1 %v1093_v9  ;;  %1204 = vadd.xlane.f32.xlu0 %v1092_v10 }
 0x172   : > { %1154 = vadd.xlane.f32.xlu1 %v1067_v11  ;;  %1152 = vadd.xlane.f32.xlu0 %v1066_v12 }
 0x176   : > { %1218 = vadd.xlane.f32.xlu1 %v1099_v13  ;;  %1216 = vadd.xlane.f32.xlu0 %v1098_v14  ;;  %v1017_v13 = vld [vmem:[#allocation2 + $0x128] sm:$0xff]  ;;  %v1016_v14 = vld [vmem:[#allocation2 + $0x120] sm:$0xff] }
 0x17a   : > { %1150 = vadd.xlane.f32.xlu1 %v1065_v15  ;;  %1148 = vadd.xlane.f32.xlu0 %v1064_v16 }
 0x17e   : > { %1214 = vadd.xlane.f32.xlu1 %v1097_v17  ;;  %1212 = vadd.xlane.f32.xlu0 %v1096_v18 }
 0x182   : > { %1162 = vadd.xlane.f32.xlu1 %v1071_v19  ;;  %1160 = vadd.xlane.f32.xlu0 %v1070_v20  ;;  %v991_v19 = vld [vmem:[#allocation2 + $0x58] sm:$0xff]  ;;  %v990_v20 = vld [vmem:[#allocation2 + $0x50] sm:$0xff] }
 0x186   : > { %1226 = vadd.xlane.f32.xlu1 %v1103_v21  ;;  %1224 = vadd.xlane.f32.xlu0 %v1102_v22 }
 0x18a   : > { %1158 = vadd.xlane.f32.xlu1 %v1069_v23  ;;  %1156 = vadd.xlane.f32.xlu0 %v1068_v24 }
 0x18e   : > { %1222 = vadd.xlane.f32.xlu1 %v1101_v25  ;;  %1220 = vadd.xlane.f32.xlu0 %v1100_v26  ;;  %v1023_v25 = vld [vmem:[#allocation2 + $0x158] sm:$0xff]  ;;  %v1022_v26 = vld [vmem:[#allocation2 + $0x150] sm:$0xff] }
 0x192   : > { %1170 = vadd.xlane.f32.xlu1 %v1075_v27  ;;  %1168 = vadd.xlane.f32.xlu0 %v1074_v28 }
 0x196   : > { %1166 = vadd.xlane.f32.xlu1 %v1073_v29  ;;  %1164 = vadd.xlane.f32.xlu0 %v1072_v30 }
 0x19a   : > { %1230 = vadd.xlane.f32.xlu1 %v1105_v31  ;;  %1228 = vadd.xlane.f32.xlu0 %v1104_v32  ;;  %v989_v31 = vld [vmem:[#allocation2 + $0x48] sm:$0xff]  ;;  %v988_v32 = vld [vmem:[#allocation2 + $0x40] sm:$0xff] }
 0x19e   : > { %1234 = vadd.xlane.f32.xlu1 %v1107_v33  ;;  %1232 = vadd.xlane.f32.xlu0 %v1106_v34 }
 0x1af   : > { %v1113_v37 = vpop.xlane.xlu1 %1112  ;;  %v1177_v38 = vpop.xlane.xlu0 %1176 }
 0x1b0   : > { %v1238_v39 = vadd.f32 %v1113_v37, %v982_v35  ;;  %v1270_v40 = vadd.f32 %v1177_v38, %v1014_v36  ;;  %v1021_v37 = vld [vmem:[#allocation2 + $0x148] sm:$0xff]  ;;  %v1020_v38 = vld [vmem:[#allocation2 + $0x140] sm:$0xff] }
 0x1b2   : > { %1303 = vst.msk [vmem:[#allocation2 + $0x10] sm:$0xff] %vm1300_vm3, %v1238_v39  ;;  %1335 = vst.msk [vmem:[#allocation2 + $0x110] sm:$0xff] %vm1300_vm3, %v1270_v40 }
 0x1b3   : > { %v1115_v43 = vpop.xlane.xlu1 %1114  ;;  %v1109_v44 = vpop.xlane.xlu0 %1108 }
 0x1b4   : > { %v1239_v45 = vadd.f32 %v1115_v43, %v983_v41  ;;  %v1236_v46 = vadd.f32 %v1109_v44, %v980_v42  ;;  %v995_v43 = vld [vmem:[#allocation2 + $0x78] sm:$0xff]  ;;  %v994_v44 = vld [vmem:[#allocation2 + $0x70] sm:$0xff] }
 0x1b6   : > { %1304 = vst.msk [vmem:[#allocation2 + $0x18] sm:$0xff] %vm1300_vm3, %v1239_v45  ;;  %1301 = vst.msk [vmem:[#allocation2] sm:$0xff] %vm1300_vm3, %v1236_v46 }
 0x1b7   : > { %v1179_v49 = vpop.xlane.xlu1 %1178  ;;  %v1173_v50 = vpop.xlane.xlu0 %1172 }
 0x1b8   : > { %v1271_v51 = vadd.f32 %v1179_v49, %v1015_v47  ;;  %v1268_v52 = vadd.f32 %v1173_v50, %v1012_v48  ;;  %v1027_v49 = vld [vmem:[#allocation2 + $0x178] sm:$0xff]  ;;  %v1026_v50 = vld [vmem:[#allocation2 + $0x170] sm:$0xff] }
 0x1ba   : > { %1336 = vst.msk [vmem:[#allocation2 + $0x118] sm:$0xff] %vm1300_vm3, %v1271_v51  ;;  %1333 = vst.msk [vmem:[#allocation2 + $0x100] sm:$0xff] %vm1300_vm3, %v1268_v52 }
 0x1bb   : > { %v1175_v55 = vpop.xlane.xlu1 %1174  ;;  %v1111_v57 = vpop.xlane.xlu0 %1110 }
 0x1bc   : > { %v1269_v56 = vadd.f32 %v1175_v55, %v1013_v53  ;;  %v1237_v58 = vadd.f32 %v1111_v57, %v981_v54  ;;  %v993_v55 = vld [vmem:[#allocation2 + $0x68] sm:$0xff] }
 0x1be   : > { %1334 = vst.msk [vmem:[#allocation2 + $0x108] sm:$0xff] %vm1300_vm3, %v1269_v56  ;;  %1302 = vst.msk [vmem:[#allocation2 + $0x8] sm:$0xff] %vm1300_vm3, %v1237_v58  ;;  %v992_v56 = vld [vmem:[#allocation2 + $0x60] sm:$0xff] }
 0x1bf   : > { %v1123_v61 = vpop.xlane.xlu1 %1122  ;;  %v1121_v62 = vpop.xlane.xlu0 %1120 }
 0x1c0   : > { %v1243_v63 = vadd.f32 %v1123_v61, %v987_v59  ;;  %v1242_v0 = vadd.f32 %v1121_v62, %v986_v60  ;;  %v1025_v61 = vld [vmem:[#allocation2 + $0x168] sm:$0xff]  ;;  %v1024_v62 = vld [vmem:[#allocation2 + $0x160] sm:$0xff] }
 0x1c2   : > { %1308 = vst.msk [vmem:[#allocation2 + $0x38] sm:$0xff] %vm1300_vm3, %v1243_v63  ;;  %1307 = vst.msk [vmem:[#allocation2 + $0x30] sm:$0xff] %vm1300_vm3, %v1242_v0 }
 0x1c3   : > { %v1187_v3 = vpop.xlane.xlu1 %1186  ;;  %v1185_v4 = vpop.xlane.xlu0 %1184 }
 0x1c4   : > { %v1275_v5 = vadd.f32 %v1187_v3, %v1019_v1  ;;  %v1274_v6 = vadd.f32 %v1185_v4, %v1018_v2  ;;  %v999_v3 = vld [vmem:[#allocation2 + $0x98] sm:$0xff]  ;;  %v998_v4 = vld [vmem:[#allocation2 + $0x90] sm:$0xff] }
 0x1c6   : > { %1340 = vst.msk [vmem:[#allocation2 + $0x138] sm:$0xff] %vm1300_vm3, %v1275_v5  ;;  %1339 = vst.msk [vmem:[#allocation2 + $0x130] sm:$0xff] %vm1300_vm3, %v1274_v6 }
 0x1c7   : > { %v1119_v9 = vpop.xlane.xlu1 %1118  ;;  %v1117_v10 = vpop.xlane.xlu0 %1116 }
 0x1c8   : > { %v1241_v11 = vadd.f32 %v1119_v9, %v985_v7  ;;  %v1240_v12 = vadd.f32 %v1117_v10, %v984_v8  ;;  %v1031_v9 = vld [vmem:[#allocation2 + $0x198] sm:$0xff]  ;;  %v1030_v10 = vld [vmem:[#allocation2 + $0x190] sm:$0xff] }
 0x1ca   : > { %1306 = vst.msk [vmem:[#allocation2 + $0x28] sm:$0xff] %vm1300_vm3, %v1241_v11  ;;  %1305 = vst.msk [vmem:[#allocation2 + $0x20] sm:$0xff] %vm1300_vm3, %v1240_v12 }
 0x1cb   : > { %v1183_v15 = vpop.xlane.xlu1 %1182  ;;  %v1181_v16 = vpop.xlane.xlu0 %1180 }
 0x1cc   : > { %v1273_v17 = vadd.f32 %v1183_v15, %v1017_v13  ;;  %v1272_v18 = vadd.f32 %v1181_v16, %v1016_v14  ;;  %v997_v15 = vld [vmem:[#allocation2 + $0x88] sm:$0xff]  ;;  %v996_v16 = vld [vmem:[#allocation2 + $0x80] sm:$0xff] }
 0x1ce   : > { %1338 = vst.msk [vmem:[#allocation2 + $0x128] sm:$0xff] %vm1300_vm3, %v1273_v17  ;;  %1337 = vst.msk [vmem:[#allocation2 + $0x120] sm:$0xff] %vm1300_vm3, %v1272_v18 }
 0x1cf   : > { %v1131_v21 = vpop.xlane.xlu1 %1130  ;;  %v1129_v22 = vpop.xlane.xlu0 %1128 }
 0x1d0   : > { %v1247_v23 = vadd.f32 %v1131_v21, %v991_v19  ;;  %v1246_v24 = vadd.f32 %v1129_v22, %v990_v20  ;;  %v1029_v21 = vld [vmem:[#allocation2 + $0x188] sm:$0xff]  ;;  %v1028_v22 = vld [vmem:[#allocation2 + $0x180] sm:$0xff] }
 0x1d2   : > { %1312 = vst.msk [vmem:[#allocation2 + $0x58] sm:$0xff] %vm1300_vm3, %v1247_v23  ;;  %1311 = vst.msk [vmem:[#allocation2 + $0x50] sm:$0xff] %vm1300_vm3, %v1246_v24 }
 0x1d3   : > { %v1195_v27 = vpop.xlane.xlu1 %1194  ;;  %v1193_v28 = vpop.xlane.xlu0 %1192 }
 0x1d4   : > { %v1279_v29 = vadd.f32 %v1195_v27, %v1023_v25  ;;  %v1278_v30 = vadd.f32 %v1193_v28, %v1022_v26  ;;  %v1003_v27 = vld [vmem:[#allocation2 + $0xb8] sm:$0xff]  ;;  %v1002_v28 = vld [vmem:[#allocation2 + $0xb0] sm:$0xff] }
 0x1d6   : > { %1344 = vst.msk [vmem:[#allocation2 + $0x158] sm:$0xff] %vm1300_vm3, %v1279_v29  ;;  %1343 = vst.msk [vmem:[#allocation2 + $0x150] sm:$0xff] %vm1300_vm3, %v1278_v30 }
 0x1d7   : > { %v1127_v33 = vpop.xlane.xlu1 %1126  ;;  %v1125_v34 = vpop.xlane.xlu0 %1124 }
 0x1d8   : > { %v1245_v35 = vadd.f32 %v1127_v33, %v989_v31  ;;  %v1244_v36 = vadd.f32 %v1125_v34, %v988_v32  ;;  %v1035_v33 = vld [vmem:[#allocation2 + $0x1b8] sm:$0xff]  ;;  %v1034_v34 = vld [vmem:[#allocation2 + $0x1b0] sm:$0xff] }
 0x1da   : > { %1310 = vst.msk [vmem:[#allocation2 + $0x48] sm:$0xff] %vm1300_vm3, %v1245_v35  ;;  %1309 = vst.msk [vmem:[#allocation2 + $0x40] sm:$0xff] %vm1300_vm3, %v1244_v36 }
 0x1db   : > { %v1191_v39 = vpop.xlane.xlu1 %1190  ;;  %v1189_v40 = vpop.xlane.xlu0 %1188 }
 0x1dc   : > { %v1277_v41 = vadd.f32 %v1191_v39, %v1021_v37  ;;  %v1276_v42 = vadd.f32 %v1189_v40, %v1020_v38  ;;  %v1001_v39 = vld [vmem:[#allocation2 + $0xa8] sm:$0xff]  ;;  %v1000_v40 = vld [vmem:[#allocation2 + $0xa0] sm:$0xff] }
 0x1de   : > { %1342 = vst.msk [vmem:[#allocation2 + $0x148] sm:$0xff] %vm1300_vm3, %v1277_v41  ;;  %1341 = vst.msk [vmem:[#allocation2 + $0x140] sm:$0xff] %vm1300_vm3, %v1276_v42 }
 0x1df   : > { %v1139_v45 = vpop.xlane.xlu1 %1138  ;;  %v1137_v46 = vpop.xlane.xlu0 %1136 }
 0x1e0   : > { %v1251_v47 = vadd.f32 %v1139_v45, %v995_v43  ;;  %v1250_v48 = vadd.f32 %v1137_v46, %v994_v44  ;;  %v1033_v45 = vld [vmem:[#allocation2 + $0x1a8] sm:$0xff]  ;;  %v1032_v46 = vld [vmem:[#allocation2 + $0x1a0] sm:$0xff] }
 0x1e2   : > { %1316 = vst.msk [vmem:[#allocation2 + $0x78] sm:$0xff] %vm1300_vm3, %v1251_v47  ;;  %1315 = vst.msk [vmem:[#allocation2 + $0x70] sm:$0xff] %vm1300_vm3, %v1250_v48 }
 0x1e3   : > { %v1203_v51 = vpop.xlane.xlu1 %1202  ;;  %v1201_v52 = vpop.xlane.xlu0 %1200 }
 0x1e4   : > { %v1283_v53 = vadd.f32 %v1203_v51, %v1027_v49  ;;  %v1282_v54 = vadd.f32 %v1201_v52, %v1026_v50  ;;  %v1007_v51 = vld [vmem:[#allocation2 + $0xd8] sm:$0xff]  ;;  %v1006_v52 = vld [vmem:[#allocation2 + $0xd0] sm:$0xff] }
 0x1e6   : > { %1348 = vst.msk [vmem:[#allocation2 + $0x178] sm:$0xff] %vm1300_vm3, %v1283_v53  ;;  %1347 = vst.msk [vmem:[#allocation2 + $0x170] sm:$0xff] %vm1300_vm3, %v1282_v54 }
 0x1e7   : > { %v1135_v57 = vpop.xlane.xlu1 %1134  ;;  %v1133_v58 = vpop.xlane.xlu0 %1132 }
 0x1e8   : > { %v1249_v59 = vadd.f32 %v1135_v57, %v993_v55  ;;  %v1248_v60 = vadd.f32 %v1133_v58, %v992_v56  ;;  %v1039_v57 = vld [vmem:[#allocation2 + $0x1d8] sm:$0xff]  ;;  %v1038_v58 = vld [vmem:[#allocation2 + $0x1d0] sm:$0xff] }
 0x1ea   : > { %1314 = vst.msk [vmem:[#allocation2 + $0x68] sm:$0xff] %vm1300_vm3, %v1249_v59  ;;  %1313 = vst.msk [vmem:[#allocation2 + $0x60] sm:$0xff] %vm1300_vm3, %v1248_v60 }
 0x1eb   : > { %v1199_v63 = vpop.xlane.xlu1 %1198  ;;  %v1197_v0 = vpop.xlane.xlu0 %1196 }
 0x1ec   : > { %v1281_v1 = vadd.f32 %v1199_v63, %v1025_v61  ;;  %v1280_v2 = vadd.f32 %v1197_v0, %v1024_v62  ;;  %v1005_v63 = vld [vmem:[#allocation2 + $0xc8] sm:$0xff]  ;;  %v1004_v0 = vld [vmem:[#allocation2 + $0xc0] sm:$0xff] }
 0x1ee   : > { %1346 = vst.msk [vmem:[#allocation2 + $0x168] sm:$0xff] %vm1300_vm3, %v1281_v1  ;;  %1345 = vst.msk [vmem:[#allocation2 + $0x160] sm:$0xff] %vm1300_vm3, %v1280_v2 }
 0x1ef   : > { %v1147_v5 = vpop.xlane.xlu1 %1146  ;;  %v1145_v6 = vpop.xlane.xlu0 %1144 }
 0x1f0   : > { %v1255_v7 = vadd.f32 %v1147_v5, %v999_v3  ;;  %v1254_v8 = vadd.f32 %v1145_v6, %v998_v4  ;;  %v1037_v5 = vld [vmem:[#allocation2 + $0x1c8] sm:$0xff]  ;;  %v1036_v6 = vld [vmem:[#allocation2 + $0x1c0] sm:$0xff] }
 0x1f2   : > { %1320 = vst.msk [vmem:[#allocation2 + $0x98] sm:$0xff] %vm1300_vm3, %v1255_v7  ;;  %1319 = vst.msk [vmem:[#allocation2 + $0x90] sm:$0xff] %vm1300_vm3, %v1254_v8 }
 0x1f3   : > { %v1211_v11 = vpop.xlane.xlu1 %1210  ;;  %v1209_v12 = vpop.xlane.xlu0 %1208 }
 0x1f4   : > { %v1287_v13 = vadd.f32 %v1211_v11, %v1031_v9  ;;  %v1286_v14 = vadd.f32 %v1209_v12, %v1030_v10  ;;  %v1011_v11 = vld [vmem:[#allocation2 + $0xf8] sm:$0xff]  ;;  %v1010_v12 = vld [vmem:[#allocation2 + $0xf0] sm:$0xff] }
 0x1f6   : > { %1352 = vst.msk [vmem:[#allocation2 + $0x198] sm:$0xff] %vm1300_vm3, %v1287_v13  ;;  %1351 = vst.msk [vmem:[#allocation2 + $0x190] sm:$0xff] %vm1300_vm3, %v1286_v14 }
 0x1f7   : > { %v1143_v17 = vpop.xlane.xlu1 %1142  ;;  %v1141_v18 = vpop.xlane.xlu0 %1140 }
 0x1f8   : > { %v1253_v19 = vadd.f32 %v1143_v17, %v997_v15  ;;  %v1252_v20 = vadd.f32 %v1141_v18, %v996_v16  ;;  %v1009_v17 = vld [vmem:[#allocation2 + $0xe8] sm:$0xff]  ;;  %v1008_v18 = vld [vmem:[#allocation2 + $0xe0] sm:$0xff] }
 0x1fa   : > { %1318 = vst.msk [vmem:[#allocation2 + $0x88] sm:$0xff] %vm1300_vm3, %v1253_v19  ;;  %1317 = vst.msk [vmem:[#allocation2 + $0x80] sm:$0xff] %vm1300_vm3, %v1252_v20 }
 0x1fb   : > { %v1207_v23 = vpop.xlane.xlu1 %1206  ;;  %v1205_v24 = vpop.xlane.xlu0 %1204 }
 0x1fc   : > { %v1285_v25 = vadd.f32 %v1207_v23, %v1029_v21  ;;  %v1284_v26 = vadd.f32 %v1205_v24, %v1028_v22  ;;  %v1041_v23 = vld [vmem:[#allocation2 + $0x1e8] sm:$0xff]  ;;  %v1040_v24 = vld [vmem:[#allocation2 + $0x1e0] sm:$0xff] }
 0x1fe   : > { %1350 = vst.msk [vmem:[#allocation2 + $0x188] sm:$0xff] %vm1300_vm3, %v1285_v25  ;;  %1349 = vst.msk [vmem:[#allocation2 + $0x180] sm:$0xff] %vm1300_vm3, %v1284_v26 }
 0x1ff   : > { %v1155_v29 = vpop.xlane.xlu1 %1154  ;;  %v1153_v30 = vpop.xlane.xlu0 %1152 }
 0x200   : > { %v1259_v31 = vadd.f32 %v1155_v29, %v1003_v27  ;;  %v1258_v32 = vadd.f32 %v1153_v30, %v1002_v28  ;;  %v1043_v29 = vld [vmem:[#allocation2 + $0x1f8] sm:$0xff]  ;;  %v1042_v30 = vld [vmem:[#allocation2 + $0x1f0] sm:$0xff] }
 0x202   : > { %1324 = vst.msk [vmem:[#allocation2 + $0xb8] sm:$0xff] %vm1300_vm3, %v1259_v31  ;;  %1323 = vst.msk [vmem:[#allocation2 + $0xb0] sm:$0xff] %vm1300_vm3, %v1258_v32 }
 0x203   : > { %v1219_v35 = vpop.xlane.xlu1 %1218  ;;  %v1217_v36 = vpop.xlane.xlu0 %1216 }
 0x204   : > { %v1291_v37 = vadd.f32 %v1219_v35, %v1035_v33  ;;  %v1290_v38 = vadd.f32 %v1217_v36, %v1034_v34  ;;  %v1369_v35 = vld [vmem:[#allocation2] sm:$0xff] (!%p1959_p5)  ;;  %v1370_v36 = vld [vmem:[#allocation2 + $0x8] sm:$0xff] (!%p1959_p5) }
 0x206   : > { %1356 = vst.msk [vmem:[#allocation2 + $0x1b8] sm:$0xff] %vm1300_vm3, %v1291_v37  ;;  %1355 = vst.msk [vmem:[#allocation2 + $0x1b0] sm:$0xff] %vm1300_vm3, %v1290_v38  ;;  %v1371_v37 = vld [vmem:[#allocation2 + $0x10] sm:$0xff] (!%p1959_p5)  ;;  %v1372_v38 = vld [vmem:[#allocation2 + $0x18] sm:$0xff] (!%p1959_p5) }
 0x207   : > { %v1151_v41 = vpop.xlane.xlu1 %1150  ;;  %v1149_v42 = vpop.xlane.xlu0 %1148 }
 0x208   : > { %v1257_v43 = vadd.f32 %v1151_v41, %v1001_v39  ;;  %v1256_v44 = vadd.f32 %v1149_v42, %v1000_v40  ;;  %v1433_v39 = vmul.f32 (!%p1959_p5), 0.00390625, %v1369_v35  ;;  %v1434_v40 = vmul.f32 (!%p1959_p5), 0.00390625, %v1370_v36  ;;  %v1373_v42 = vld [vmem:[#allocation2 + $0x20] sm:$0xff] (!%p1959_p5) }
 0x209   : > { %v1435_v41 = vmul.f32 (!%p1959_p5), 0.00390625, %v1371_v37  ;;  %v1509_v35 = vld [vmem:[%s3021_s2 + $0x60] sm:$0xff] (!%p1959_p5) }
 0x20a   : > { %1322 = vst.msk [vmem:[#allocation2 + $0xa8] sm:$0xff] %vm1300_vm3, %v1257_v43  ;;  %1321 = vst.msk [vmem:[#allocation2 + $0xa0] sm:$0xff] %vm1300_vm3, %v1256_v44  ;;  %v1436_v43 = vmul.f32 (!%p1959_p5), 0.00390625, %v1372_v38  ;;  %v1497_v44 = vld [vmem:[%s3021_s2] sm:$0xff] (!%p1959_p5) }
 0x20b   : > { %v1215_v47 = vpop.xlane.xlu1 %1214  ;;  %v1213_v48 = vpop.xlane.xlu0 %1212 }
 0x20c   : > { %v1289_v49 = vadd.f32 %v1215_v47, %v1033_v45  ;;  %v1288_v50 = vadd.f32 %v1213_v48, %v1032_v46  ;;  %v1498_v45 = vld [vmem:[%s3021_s2 + $0x8] sm:$0xff] (!%p1959_p5)  ;;  %v1499_v47 = vld [vmem:[%s3021_s2 + $0x10] sm:$0xff] (!%p1959_p5)  ;;  %v1500_v48 = vld [vmem:[%s3021_s2 + $0x18] sm:$0xff] (!%p1959_p5) }
 0x20d   : > { %v1374_v46 = vld [vmem:[#allocation2 + $0x28] sm:$0xff] (!%p1959_p5) }
 0x20e   : > { %1354 = vst.msk [vmem:[#allocation2 + $0x1a8] sm:$0xff] %vm1300_vm3, %v1289_v49  ;;  %1353 = vst.msk [vmem:[#allocation2 + $0x1a0] sm:$0xff] %vm1300_vm3, %v1288_v50  ;;  %v1561_v49 = vmul.f32 (!%p1959_p5), %v1497_v44, %v1433_v39  ;;  %v1562_v50 = vmul.f32 (!%p1959_p5), %v1498_v45, %v1434_v40 }
 0x20f   : > { %v1163_v53 = vpop.xlane.xlu1 %1162  ;;  %v1161_v54 = vpop.xlane.xlu0 %1160 }
 0x210   : > { %v1263_v55 = vadd.f32 %v1163_v53, %v1007_v51  ;;  %v1262_v56 = vadd.f32 %v1161_v54, %v1006_v52  ;;  %v1437_v51 = vmul.f32 (!%p1959_p5), 0.00390625, %v1373_v42  ;;  %v1563_v52 = vmul.f32 (!%p1959_p5), %v1499_v47, %v1435_v41  ;;  %v1375_v53 = vld [vmem:[#allocation2 + $0x30] sm:$0xff] (!%p1959_p5)  ;;  %v1501_v54 = vld [vmem:[%s3021_s2 + $0x20] sm:$0xff] (!%p1959_p5)  ;;  %v1384_v41 = vld [vmem:[#allocation2 + $0x78] sm:$0xff] (!%p1959_p5) }
 0x211   : > { %v1510_v42 = vld [vmem:[%s3021_s2 + $0x68] sm:$0xff] (!%p1959_p5)  ;;  %v1385_v47 = vld [vmem:[#allocation2 + $0x80] sm:$0xff] (!%p1959_p5) }
 0x212   : > { %1328 = vst.msk [vmem:[#allocation2 + $0xd8] sm:$0xff] %vm1300_vm3, %v1263_v55  ;;  %1327 = vst.msk [vmem:[#allocation2 + $0xd0] sm:$0xff] %vm1300_vm3, %v1262_v56  ;;  %v1625_v55 = vsel (!%p1959_p5), %vm1300_vm3, %v1561_v49, 0.0  ;;  %v1438_v56 = vmul.f32 (!%p1959_p5), 0.00390625, %v1374_v46 }
 0x213   : > { %v1227_v59 = vpop.xlane.xlu1 %1226  ;;  %v1225_v60 = vpop.xlane.xlu0 %1224 }
 0x214   : > { %v1295_v61 = vadd.f32 %v1227_v59, %v1039_v57  ;;  %v1294_v62 = vadd.f32 %v1225_v60, %v1038_v58  ;;  %v1564_v57 = vmul.f32 (!%p1959_p5), %v1500_v48, %v1436_v43  ;;  %v1626_v58 = vsel (!%p1959_p5), %vm1300_vm3, %v1562_v50, 0.0  ;;  %v1376_v59 = vld [vmem:[#allocation2 + $0x38] sm:$0xff] (!%p1959_p5)  ;;  %v1502_v60 = vld [vmem:[%s3021_s2 + $0x28] sm:$0xff] (!%p1959_p5)  ;;  %v1511_v48 = vld [vmem:[%s3021_s2 + $0x70] sm:$0xff] (!%p1959_p5) }
 0x215   : > { %v1448_v50 = vmul.f32 (!%p1959_p5), 0.00390625, %v1384_v41 }
 0x216   : > { %1360 = vst.msk [vmem:[#allocation2 + $0x1d8] sm:$0xff] %vm1300_vm3, %v1295_v61  ;;  %1359 = vst.msk [vmem:[#allocation2 + $0x1d0] sm:$0xff] %vm1300_vm3, %v1294_v62  ;;  %v1627_v61 = vadd.f32 (!%p1959_p5), %v1626_v58, %v1625_v55  ;;  %v1439_v62 = vmul.f32 (!%p1959_p5), 0.00390625, %v1375_v53  ;;  %v1512_v55 = vld [vmem:[%s3021_s2 + $0x78] sm:$0xff] (!%p1959_p5) }
 0x217   : > { %v1159_v1 = vpop.xlane.xlu1 %1158  ;;  %v1157_v2 = vpop.xlane.xlu0 %1156 }
 0x218   : > { %v1261_v3 = vadd.f32 %v1159_v1, %v1005_v63  ;;  %v1260_v4 = vadd.f32 %v1157_v2, %v1004_v0  ;;  %v1565_v63 = vmul.f32 (!%p1959_p5), %v1501_v54, %v1437_v51  ;;  %v1628_v0 = vsel (!%p1959_p5), %vm1300_vm3, %v1563_v52, 0.0  ;;  %v1377_v1 = vld [vmem:[#allocation2 + $0x40] sm:$0xff] (!%p1959_p5)  ;;  %v1503_v2 = vld [vmem:[%s3021_s2 + $0x30] sm:$0xff] (!%p1959_p5)  ;;  %v1386_v54 = vld [vmem:[#allocation2 + $0x88] sm:$0xff] (!%p1959_p5) }
 0x21a   : > { %1326 = vst.msk [vmem:[#allocation2 + $0xc8] sm:$0xff] %vm1300_vm3, %v1261_v3  ;;  %1325 = vst.msk [vmem:[#allocation2 + $0xc0] sm:$0xff] %vm1300_vm3, %v1260_v4  ;;  %v1629_v3 = vadd.f32 (!%p1959_p5), %v1628_v0, %v1627_v61  ;;  %v1440_v4 = vmul.f32 (!%p1959_p5), 0.00390625, %v1376_v59  ;;  %v1513_v61 = vld [vmem:[%s3021_s2 + $0x80] sm:$0xff] (!%p1959_p5)  ;;  %v1576_v0 = vmul.f32 (!%p1959_p5), %v1512_v55, %v1448_v50  ;;  %v1396_v50 = vld [vmem:[#allocation2 + $0xd8] sm:$0xff] (!%p1959_p5) }
 0x21b   : > { %v1223_v7 = vpop.xlane.xlu1 %1222  ;;  %v1221_v8 = vpop.xlane.xlu0 %1220 }
 0x21c   : > { %v1293_v9 = vadd.f32 %v1223_v7, %v1037_v5  ;;  %v1292_v10 = vadd.f32 %v1221_v8, %v1036_v6  ;;  %v1566_v5 = vmul.f32 (!%p1959_p5), %v1502_v60, %v1438_v56  ;;  %v1630_v6 = vsel (!%p1959_p5), %vm1300_vm3, %v1564_v57, 0.0  ;;  %v1378_v7 = vld [vmem:[#allocation2 + $0x48] sm:$0xff] (!%p1959_p5)  ;;  %v1504_v8 = vld [vmem:[%s3021_s2 + $0x38] sm:$0xff] (!%p1959_p5)  ;;  %v1387_v60 = vld [vmem:[#allocation2 + $0x90] sm:$0xff] (!%p1959_p5) }
 0x21d   : > { %v1449_v57 = vmul.f32 (!%p1959_p5), 0.00390625, %v1385_v47 }
 0x21e   : > { %1358 = vst.msk [vmem:[#allocation2 + $0x1c8] sm:$0xff] %vm1300_vm3, %v1293_v9  ;;  %1357 = vst.msk [vmem:[#allocation2 + $0x1c0] sm:$0xff] %vm1300_vm3, %v1292_v10  ;;  %v1631_v9 = vadd.f32 (!%p1959_p5), %v1630_v6, %v1629_v3  ;;  %v1441_v10 = vmul.f32 (!%p1959_p5), 0.00390625, %v1377_v1  ;;  %v1514_v3 = vld [vmem:[%s3021_s2 + $0x88] sm:$0xff] (!%p1959_p5) }
 0x21f   : > { %v1171_v13 = vpop.xlane.xlu1 %1170  ;;  %v1169_v14 = vpop.xlane.xlu0 %1168  ;;  %v1577_v6 = vmul.f32 (!%p1959_p5), %v1513_v61, %v1449_v57  ;;  %v1523_v57 = vld [vmem:[%s3021_s2 + $0xd0] sm:$0xff] (!%p1959_p5) }
 0x220   : > { %v1267_v15 = vadd.f32 %v1171_v13, %v1011_v11  ;;  %v1266_v16 = vadd.f32 %v1169_v14, %v1010_v12  ;;  %v1567_v11 = vmul.f32 (!%p1959_p5), %v1503_v2, %v1439_v62  ;;  %v1632_v12 = vsel (!%p1959_p5), %vm1300_vm3, %v1565_v63, 0.0  ;;  %v1379_v13 = vld [vmem:[#allocation2 + $0x50] sm:$0xff] (!%p1959_p5)  ;;  %v1380_v14 = vld [vmem:[#allocation2 + $0x58] sm:$0xff] (!%p1959_p5) }
 0x221   : > { %v1450_v63 = vmul.f32 (!%p1959_p5), 0.00390625, %v1386_v54  ;;  %v1388_v2 = vld [vmem:[#allocation2 + $0x98] sm:$0xff] (!%p1959_p5) }
 0x222   : > { %1332 = vst.msk [vmem:[#allocation2 + $0xf8] sm:$0xff] %vm1300_vm3, %v1267_v15  ;;  %1331 = vst.msk [vmem:[#allocation2 + $0xf0] sm:$0xff] %vm1300_vm3, %v1266_v16  ;;  %v1505_v15 = vld [vmem:[%s3021_s2 + $0x40] sm:$0xff] (!%p1959_p5)  ;;  %v1633_v16 = vadd.f32 (!%p1959_p5), %v1632_v12, %v1631_v9  ;;  %v1515_v9 = vld [vmem:[%s3021_s2 + $0x90] sm:$0xff] (!%p1959_p5) }
 0x223   : > { %v1167_v19 = vpop.xlane.xlu1 %1166  ;;  %v1165_v20 = vpop.xlane.xlu0 %1164  ;;  %v1578_v12 = vmul.f32 (!%p1959_p5), %v1514_v3, %v1450_v63  ;;  %v1524_v63 = vld [vmem:[%s3021_s2 + $0xd8] sm:$0xff] (!%p1959_p5) }
 0x224   : > { %v1265_v21 = vadd.f32 %v1167_v19, %v1009_v17  ;;  %v1264_v22 = vadd.f32 %v1165_v20, %v1008_v18  ;;  %v1442_v17 = vmul.f32 (!%p1959_p5), 0.00390625, %v1378_v7  ;;  %v1568_v18 = vmul.f32 (!%p1959_p5), %v1504_v8, %v1440_v4  ;;  %v1381_v20 = vld [vmem:[#allocation2 + $0x60] sm:$0xff] (!%p1959_p5) }
 0x225   : > { %v1634_v19 = vsel (!%p1959_p5), %vm1300_vm3, %v1566_v5, 0.0  ;;  %v1451_v5 = vmul.f32 (!%p1959_p5), 0.00390625, %v1387_v60  ;;  %v1389_v8 = vld [vmem:[#allocation2 + $0xa0] sm:$0xff] (!%p1959_p5) }
 0x226   : > { %1330 = vst.msk [vmem:[#allocation2 + $0xe8] sm:$0xff] %vm1300_vm3, %v1265_v21  ;;  %1329 = vst.msk [vmem:[#allocation2 + $0xe0] sm:$0xff] %vm1300_vm3, %v1264_v22  ;;  %v1506_v21 = vld [vmem:[%s3021_s2 + $0x48] sm:$0xff] (!%p1959_p5)  ;;  %v1635_v22 = vadd.f32 (!%p1959_p5), %v1634_v19, %v1633_v16  ;;  %v1656_v19 = vsel (!%p1959_p5), %vm1300_vm3, %v1577_v6, 0.0 }
 0x227   : > { %v1231_v25 = vpop.xlane.xlu1 %1230  ;;  %v1229_v26 = vpop.xlane.xlu0 %1228 }
 0x228   : > { %v1297_v27 = vadd.f32 %v1231_v25, %v1041_v23  ;;  %v1296_v28 = vadd.f32 %v1229_v26, %v1040_v24  ;;  %1368 = sbr.rel (%p1959_p5) target bundleno = 723 (0x2d3), region = 52  ;;  %v1443_v23 = vmul.f32 (!%p1959_p5), 0.00390625, %v1379_v13  ;;  %v1444_v24 = vmul.f32 (!%p1959_p5), 0.00390625, %v1380_v14  ;;  %v1390_v14 = vld [vmem:[#allocation2 + $0xa8] sm:$0xff] (!%p1959_p5) }
 0x229   : > { %v1569_v25 = vmul.f32 (!%p1959_p5), %v1505_v15, %v1441_v10  ;;  %v1636_v26 = vsel (!%p1959_p5), %vm1300_vm3, %v1567_v11, 0.0  ;;  %v1452_v11 = vmul.f32 (!%p1959_p5), 0.00390625, %v1388_v2  ;;  %v1654_v13 = vsel (!%p1959_p5), %vm1300_vm3, %v1576_v0, 0.0  ;;  %v1516_v15 = vld [vmem:[%s3021_s2 + $0x98] sm:$0xff] (!%p1959_p5) }
 0x22a   : > { %1362 = vst.msk [vmem:[#allocation2 + $0x1e8] sm:$0xff] %vm1300_vm3, %v1297_v27  ;;  %1361 = vst.msk [vmem:[#allocation2 + $0x1e0] sm:$0xff] %vm1300_vm3, %v1296_v28  ;;  %v1382_v27 = vld [vmem:[#allocation2 + $0x68] sm:$0xff] (!%p1959_p5)  ;;  %v1507_v28 = vld [vmem:[%s3021_s2 + $0x50] sm:$0xff] (!%p1959_p5) }
 0x22b   : > { %v1235_v31 = vpop.xlane.xlu1 %1234  ;;  %v1233_v32 = vpop.xlane.xlu0 %1232  ;;  %v1446_v37 = vmul.f32 (!%p1959_p5), 0.00390625, %v1382_v27  ;;  %v1571_v38 = vmul.f32 (!%p1959_p5), %v1507_v28, %v1443_v23  ;;  %v1640_v40 = vsel (!%p1959_p5), %vm1300_vm3, %v1569_v25, 0.0  ;;  %v1454_v23 = vmul.f32 (!%p1959_p5), 0.00390625, %v1390_v14  ;;  %v1518_v27 = vld [vmem:[%s3021_s2 + $0xa8] sm:$0xff] (!%p1959_p5) }
 0x22c   : > { %v1299_v33 = vadd.f32 %v1235_v31, %v1043_v29  ;;  %v1298_v34 = vadd.f32 %v1233_v32, %v1042_v30  ;;  %v1508_v29 = vld [vmem:[%s3021_s2 + $0x58] sm:$0xff] (!%p1959_p5)  ;;  %v1637_v30 = vadd.f32 (!%p1959_p5), %v1636_v26, %v1635_v22  ;;  %v1445_v31 = vmul.f32 (!%p1959_p5), 0.00390625, %v1381_v20  ;;  %v1391_v20 = vld [vmem:[#allocation2 + $0xb0] sm:$0xff] (!%p1959_p5) }
 0x22d   : > { %v1570_v32 = vmul.f32 (!%p1959_p5), %v1506_v21, %v1442_v17  ;;  %v1572_v39 = vmul.f32 (!%p1959_p5), %v1508_v29, %v1444_v24  ;;  %v1574_v51 = vmul.f32 (!%p1959_p5), %v1510_v42, %v1446_v37  ;;  %v1644_v52 = vsel (!%p1959_p5), %vm1300_vm3, %v1571_v38, 0.0  ;;  %v1517_v21 = vld [vmem:[%s3021_s2 + $0xa0] sm:$0xff] (!%p1959_p5)  ;;  %v1392_v26 = vld [vmem:[#allocation2 + $0xb8] sm:$0xff] (!%p1959_p5)  ;;  %v1394_v38 = vld [vmem:[#allocation2 + $0xc8] sm:$0xff] (!%p1959_p5) }
 0x22e   : > { %1364 = vst.msk [vmem:[#allocation2 + $0x1f8] sm:$0xff] %vm1300_vm3, %v1299_v33  ;;  %1363 = vst.msk [vmem:[#allocation2 + $0x1f0] sm:$0xff] %vm1300_vm3, %v1298_v34  ;;  %v1638_v33 = vsel (!%p1959_p5), %vm1300_vm3, %v1568_v18, 0.0  ;;  %v1383_v34 = vld [vmem:[#allocation2 + $0x70] sm:$0xff] (!%p1959_p5)  ;;  %v1573_v45 = vmul.f32 (!%p1959_p5), %v1509_v35, %v1445_v31  ;;  %v1453_v17 = vmul.f32 (!%p1959_p5), 0.00390625, %v1389_v8  ;;  %v1579_v18 = vmul.f32 (!%p1959_p5), %v1515_v9, %v1451_v5  ;;  %v1525_v5 = vld [vmem:[%s3021_s2 + $0xe0] sm:$0xff] (!%p1959_p5) }
 0x22f   : > { %v1639_v36 = vadd.f32 %v1638_v33, %v1637_v30  ;;  %v1447_v44 = vmul.f32 0.00390625, %v1383_v34  ;;  %v1642_v46 = vsel %vm1300_vm3, %v1570_v32, 0.0  ;;  %v1646_v53 = vsel %vm1300_vm3, %v1572_v39, 0.0  ;;  %v1393_v32 = vld [vmem:[#allocation2 + $0xc0] sm:$0xff]  ;;  %v1519_v33 = vld [vmem:[%s3021_s2 + $0xb0] sm:$0xff]  ;;  %v1520_v39 = vld [vmem:[%s3021_s2 + $0xb8] sm:$0xff] }
 0x230   : > { %v1648_v59 = vsel %vm1300_vm3, %v1573_v45, 0.0  ;;  %v1650_v1 = vsel %vm1300_vm3, %v1574_v51, 0.0  ;;  %v1580_v24 = vmul.f32 %v1516_v15, %v1452_v11  ;;  %v1658_v25 = vsel %vm1300_vm3, %v1578_v12, 0.0  ;;  %v1521_v45 = vld [vmem:[%s3021_s2 + $0xc0] sm:$0xff]  ;;  %v1522_v51 = vld [vmem:[%s3021_s2 + $0xc8] sm:$0xff] }
 0x231   : > { %v1641_v43 = vadd.f32 %v1640_v40, %v1639_v36  ;;  %v1575_v58 = vmul.f32 %v1511_v48, %v1447_v44  ;;  %v1455_v29 = vmul.f32 0.00390625, %v1391_v20  ;;  %v1581_v30 = vmul.f32 %v1517_v21, %v1453_v17  ;;  %v1395_v44 = vld [vmem:[#allocation2 + $0xd0] sm:$0xff]  ;;  %v1526_v11 = vld [vmem:[%s3021_s2 + $0xe8] sm:$0xff] }
 0x232   : > { %v1660_v31 = vsel %vm1300_vm3, %v1579_v18, 0.0  ;;  %v1456_v35 = vmul.f32 0.00390625, %v1392_v26  ;;  %v1582_v36 = vmul.f32 %v1518_v27, %v1454_v23  ;;  %v1662_v37 = vsel %vm1300_vm3, %v1580_v24, 0.0  ;;  %v1527_v17 = vld [vmem:[%s3021_s2 + $0xf0] sm:$0xff]  ;;  %v1528_v23 = vld [vmem:[%s3021_s2 + $0xf8] sm:$0xff] }
 0x233   : > { %v1643_v49 = vadd.f32 %v1642_v46, %v1641_v43  ;;  %v1652_v7 = vsel %vm1300_vm3, %v1575_v58, 0.0  ;;  %v1457_v41 = vmul.f32 0.00390625, %v1393_v32  ;;  %v1583_v42 = vmul.f32 %v1519_v33, %v1455_v29  ;;  %v1529_v29 = vld [vmem:[%s3021_s2 + $0x100] sm:$0xff] }
 0x234   : > { %v1664_v43 = vsel %vm1300_vm3, %v1581_v30, 0.0  ;;  %v1458_v47 = vmul.f32 0.00390625, %v1394_v38  ;;  %v1584_v48 = vmul.f32 %v1520_v39, %v1456_v35  ;;  %v1530_v35 = vld [vmem:[%s3021_s2 + $0x108] sm:$0xff] }
 0x235   : > { %v1645_v56 = vadd.f32 %v1644_v52, %v1643_v49  ;;  %v1666_v49 = vsel %vm1300_vm3, %v1582_v36, 0.0  ;;  %v1585_v54 = vmul.f32 %v1521_v45, %v1457_v41  ;;  %v1668_v55 = vsel %vm1300_vm3, %v1583_v42, 0.0  ;;  %v1531_v41 = vld [vmem:[%s3021_s2 + $0x110] sm:$0xff] }
 0x236   : > { %v1586_v60 = vmul.f32 %v1522_v51, %v1458_v47  ;;  %v1670_v61 = vsel %vm1300_vm3, %v1584_v48, 0.0  ;;  %v1532_v47 = vld [vmem:[%s3021_s2 + $0x118] sm:$0xff] }
 0x237   : > { %v1647_v62 = vadd.f32 %v1646_v53, %v1645_v56  ;;  %v1459_v53 = vmul.f32 0.00390625, %v1395_v44  ;;  %v1397_v56 = vld [vmem:[#allocation2 + $0xe0] sm:$0xff]  ;;  %v1672_v3 = vsel %vm1300_vm3, %v1585_v54, 0.0 }
 0x238   : > { %v1674_v9 = vsel %vm1300_vm3, %v1586_v60, 0.0 }
 0x239   : > { %v1649_v4 = vadd.f32 %v1648_v59, %v1647_v62  ;;  %v1460_v59 = vmul.f32 0.00390625, %v1396_v50  ;;  %v1398_v62 = vld [vmem:[#allocation2 + $0xe8] sm:$0xff]  ;;  %v1587_v2 = vmul.f32 %v1523_v57, %v1459_v53  ;;  %v1533_v53 = vld [vmem:[%s3021_s2 + $0x120] sm:$0xff] }
 0x23b   : > { %v1651_v10 = vadd.f32 %v1650_v1, %v1649_v4  ;;  %v1461_v1 = vmul.f32 0.00390625, %v1397_v56  ;;  %v1399_v4 = vld [vmem:[#allocation2 + $0xf0] sm:$0xff]  ;;  %v1588_v8 = vmul.f32 %v1524_v63, %v1460_v59  ;;  %v1676_v15 = vsel %vm1300_vm3, %v1587_v2, 0.0  ;;  %v1534_v59 = vld [vmem:[%s3021_s2 + $0x128] sm:$0xff] }
 0x23d   : > { %v1653_v16 = vadd.f32 %v1652_v7, %v1651_v10  ;;  %v1462_v7 = vmul.f32 0.00390625, %v1398_v62  ;;  %v1400_v10 = vld [vmem:[#allocation2 + $0xf8] sm:$0xff]  ;;  %v1589_v14 = vmul.f32 %v1525_v5, %v1461_v1  ;;  %v1678_v21 = vsel %vm1300_vm3, %v1588_v8, 0.0  ;;  %v1535_v1 = vld [vmem:[%s3021_s2 + $0x130] sm:$0xff] }
 0x23f   : > { %v1655_v22 = vadd.f32 %v1654_v13, %v1653_v16  ;;  %v1463_v13 = vmul.f32 0.00390625, %v1399_v4  ;;  %v1401_v16 = vld [vmem:[#allocation2 + $0x100] sm:$0xff]  ;;  %v1590_v20 = vmul.f32 %v1526_v11, %v1462_v7  ;;  %v1680_v27 = vsel %vm1300_vm3, %v1589_v14, 0.0  ;;  %v1536_v7 = vld [vmem:[%s3021_s2 + $0x138] sm:$0xff] }
 0x241   : > { %v1657_v28 = vadd.f32 %v1656_v19, %v1655_v22  ;;  %v1464_v19 = vmul.f32 0.00390625, %v1400_v10  ;;  %v1402_v22 = vld [vmem:[#allocation2 + $0x108] sm:$0xff]  ;;  %v1591_v26 = vmul.f32 %v1527_v17, %v1463_v13  ;;  %v1682_v33 = vsel %vm1300_vm3, %v1590_v20, 0.0  ;;  %v1537_v13 = vld [vmem:[%s3021_s2 + $0x140] sm:$0xff] }
 0x243   : > { %v1659_v34 = vadd.f32 %v1658_v25, %v1657_v28  ;;  %v1465_v25 = vmul.f32 0.00390625, %v1401_v16  ;;  %v1403_v28 = vld [vmem:[#allocation2 + $0x110] sm:$0xff]  ;;  %v1592_v32 = vmul.f32 %v1528_v23, %v1464_v19  ;;  %v1684_v39 = vsel %vm1300_vm3, %v1591_v26, 0.0  ;;  %v1538_v19 = vld [vmem:[%s3021_s2 + $0x148] sm:$0xff] }
 0x245   : > { %v1661_v40 = vadd.f32 %v1660_v31, %v1659_v34  ;;  %v1466_v31 = vmul.f32 0.00390625, %v1402_v22  ;;  %v1404_v34 = vld [vmem:[#allocation2 + $0x118] sm:$0xff]  ;;  %v1593_v38 = vmul.f32 %v1529_v29, %v1465_v25  ;;  %v1686_v45 = vsel %vm1300_vm3, %v1592_v32, 0.0  ;;  %v1539_v25 = vld [vmem:[%s3021_s2 + $0x150] sm:$0xff] }
 0x247   : > { %v1663_v46 = vadd.f32 %v1662_v37, %v1661_v40  ;;  %v1467_v37 = vmul.f32 0.00390625, %v1403_v28  ;;  %v1405_v40 = vld [vmem:[#allocation2 + $0x120] sm:$0xff]  ;;  %v1594_v44 = vmul.f32 %v1530_v35, %v1466_v31  ;;  %v1688_v51 = vsel %vm1300_vm3, %v1593_v38, 0.0  ;;  %v1540_v31 = vld [vmem:[%s3021_s2 + $0x158] sm:$0xff] }
 0x249   : > { %v1665_v52 = vadd.f32 %v1664_v43, %v1663_v46  ;;  %v1468_v43 = vmul.f32 0.00390625, %v1404_v34  ;;  %v1406_v46 = vld [vmem:[#allocation2 + $0x128] sm:$0xff]  ;;  %v1595_v50 = vmul.f32 %v1531_v41, %v1467_v37  ;;  %v1690_v57 = vsel %vm1300_vm3, %v1594_v44, 0.0  ;;  %v1541_v37 = vld [vmem:[%s3021_s2 + $0x160] sm:$0xff] }
 0x24b   : > { %v1667_v58 = vadd.f32 %v1666_v49, %v1665_v52  ;;  %v1469_v49 = vmul.f32 0.00390625, %v1405_v40  ;;  %v1407_v52 = vld [vmem:[#allocation2 + $0x130] sm:$0xff]  ;;  %v1596_v56 = vmul.f32 %v1532_v47, %v1468_v43  ;;  %v1692_v63 = vsel %vm1300_vm3, %v1595_v50, 0.0  ;;  %v1542_v43 = vld [vmem:[%s3021_s2 + $0x168] sm:$0xff] }
 0x24d   : > { %v1669_v0 = vadd.f32 %v1668_v55, %v1667_v58  ;;  %v1470_v55 = vmul.f32 0.00390625, %v1406_v46  ;;  %v1408_v58 = vld [vmem:[#allocation2 + $0x138] sm:$0xff]  ;;  %v1597_v62 = vmul.f32 %v1533_v53, %v1469_v49  ;;  %v1694_v5 = vsel %vm1300_vm3, %v1596_v56, 0.0  ;;  %v1543_v49 = vld [vmem:[%s3021_s2 + $0x170] sm:$0xff] }
 0x24f   : > { %v1671_v6 = vadd.f32 %v1670_v61, %v1669_v0  ;;  %v1471_v61 = vmul.f32 0.00390625, %v1407_v52  ;;  %v1409_v0 = vld [vmem:[#allocation2 + $0x140] sm:$0xff]  ;;  %v1598_v4 = vmul.f32 %v1534_v59, %v1470_v55  ;;  %v1696_v11 = vsel %vm1300_vm3, %v1597_v62, 0.0  ;;  %v1544_v55 = vld [vmem:[%s3021_s2 + $0x178] sm:$0xff] }
 0x251   : > { %v1673_v12 = vadd.f32 %v1672_v3, %v1671_v6  ;;  %v1472_v3 = vmul.f32 0.00390625, %v1408_v58  ;;  %v1410_v6 = vld [vmem:[#allocation2 + $0x148] sm:$0xff]  ;;  %v1599_v10 = vmul.f32 %v1535_v1, %v1471_v61  ;;  %v1698_v17 = vsel %vm1300_vm3, %v1598_v4, 0.0  ;;  %v1545_v61 = vld [vmem:[%s3021_s2 + $0x180] sm:$0xff] }
 0x253   : > { %v1675_v18 = vadd.f32 %v1674_v9, %v1673_v12  ;;  %v1473_v9 = vmul.f32 0.00390625, %v1409_v0  ;;  %v1411_v12 = vld [vmem:[#allocation2 + $0x150] sm:$0xff]  ;;  %v1600_v16 = vmul.f32 %v1536_v7, %v1472_v3  ;;  %v1700_v23 = vsel %vm1300_vm3, %v1599_v10, 0.0  ;;  %v1546_v3 = vld [vmem:[%s3021_s2 + $0x188] sm:$0xff] }
 0x255   : > { %v1677_v24 = vadd.f32 %v1676_v15, %v1675_v18  ;;  %v1474_v15 = vmul.f32 0.00390625, %v1410_v6  ;;  %v1412_v18 = vld [vmem:[#allocation2 + $0x158] sm:$0xff]  ;;  %v1601_v22 = vmul.f32 %v1537_v13, %v1473_v9  ;;  %v1702_v29 = vsel %vm1300_vm3, %v1600_v16, 0.0  ;;  %v1547_v9 = vld [vmem:[%s3021_s2 + $0x190] sm:$0xff] }
 0x257   : > { %v1679_v30 = vadd.f32 %v1678_v21, %v1677_v24  ;;  %v1475_v21 = vmul.f32 0.00390625, %v1411_v12  ;;  %v1413_v24 = vld [vmem:[#allocation2 + $0x160] sm:$0xff]  ;;  %v1602_v28 = vmul.f32 %v1538_v19, %v1474_v15  ;;  %v1704_v35 = vsel %vm1300_vm3, %v1601_v22, 0.0  ;;  %v1548_v15 = vld [vmem:[%s3021_s2 + $0x198] sm:$0xff] }
 0x259   : > { %v1681_v36 = vadd.f32 %v1680_v27, %v1679_v30  ;;  %v1476_v27 = vmul.f32 0.00390625, %v1412_v18  ;;  %v1414_v30 = vld [vmem:[#allocation2 + $0x168] sm:$0xff]  ;;  %v1603_v34 = vmul.f32 %v1539_v25, %v1475_v21  ;;  %v1706_v41 = vsel %vm1300_vm3, %v1602_v28, 0.0  ;;  %v1549_v21 = vld [vmem:[%s3021_s2 + $0x1a0] sm:$0xff] }
 0x25b   : > { %v1683_v42 = vadd.f32 %v1682_v33, %v1681_v36  ;;  %v1477_v33 = vmul.f32 0.00390625, %v1413_v24  ;;  %v1415_v36 = vld [vmem:[#allocation2 + $0x170] sm:$0xff]  ;;  %v1604_v40 = vmul.f32 %v1540_v31, %v1476_v27  ;;  %v1708_v47 = vsel %vm1300_vm3, %v1603_v34, 0.0  ;;  %v1550_v27 = vld [vmem:[%s3021_s2 + $0x1a8] sm:$0xff] }
 0x25d   : > { %v1685_v48 = vadd.f32 %v1684_v39, %v1683_v42  ;;  %v1478_v39 = vmul.f32 0.00390625, %v1414_v30  ;;  %v1416_v42 = vld [vmem:[#allocation2 + $0x178] sm:$0xff]  ;;  %v1605_v46 = vmul.f32 %v1541_v37, %v1477_v33  ;;  %v1710_v53 = vsel %vm1300_vm3, %v1604_v40, 0.0  ;;  %v1551_v33 = vld [vmem:[%s3021_s2 + $0x1b0] sm:$0xff] }
 0x25f   : > { %v1687_v54 = vadd.f32 %v1686_v45, %v1685_v48  ;;  %v1479_v45 = vmul.f32 0.00390625, %v1415_v36  ;;  %v1417_v48 = vld [vmem:[#allocation2 + $0x180] sm:$0xff]  ;;  %v1606_v52 = vmul.f32 %v1542_v43, %v1478_v39  ;;  %v1712_v59 = vsel %vm1300_vm3, %v1605_v46, 0.0  ;;  %v1552_v39 = vld [vmem:[%s3021_s2 + $0x1b8] sm:$0xff] }
 0x261   : > { %v1689_v60 = vadd.f32 %v1688_v51, %v1687_v54  ;;  %v1480_v51 = vmul.f32 0.00390625, %v1416_v42  ;;  %v1418_v54 = vld [vmem:[#allocation2 + $0x188] sm:$0xff]  ;;  %v1607_v58 = vmul.f32 %v1543_v49, %v1479_v45  ;;  %v1714_v1 = vsel %vm1300_vm3, %v1606_v52, 0.0  ;;  %v1553_v45 = vld [vmem:[%s3021_s2 + $0x1c0] sm:$0xff] }
 0x263   : > { %v1691_v2 = vadd.f32 %v1690_v57, %v1689_v60  ;;  %v1481_v57 = vmul.f32 0.00390625, %v1417_v48  ;;  %v1419_v60 = vld [vmem:[#allocation2 + $0x190] sm:$0xff]  ;;  %v1608_v0 = vmul.f32 %v1544_v55, %v1480_v51  ;;  %v1716_v7 = vsel %vm1300_vm3, %v1607_v58, 0.0  ;;  %v1554_v51 = vld [vmem:[%s3021_s2 + $0x1c8] sm:$0xff] }
 0x265   : > { %v1693_v8 = vadd.f32 %v1692_v63, %v1691_v2  ;;  %v1482_v63 = vmul.f32 0.00390625, %v1418_v54  ;;  %v1420_v2 = vld [vmem:[#allocation2 + $0x198] sm:$0xff]  ;;  %v1609_v6 = vmul.f32 %v1545_v61, %v1481_v57  ;;  %v1718_v13 = vsel %vm1300_vm3, %v1608_v0, 0.0  ;;  %v1555_v57 = vld [vmem:[%s3021_s2 + $0x1d0] sm:$0xff] }
 0x267   : > { %v1695_v14 = vadd.f32 %v1694_v5, %v1693_v8  ;;  %v1483_v5 = vmul.f32 0.00390625, %v1419_v60  ;;  %v1421_v8 = vld [vmem:[#allocation2 + $0x1a0] sm:$0xff]  ;;  %v1610_v12 = vmul.f32 %v1546_v3, %v1482_v63  ;;  %v1720_v19 = vsel %vm1300_vm3, %v1609_v6, 0.0  ;;  %v1556_v63 = vld [vmem:[%s3021_s2 + $0x1d8] sm:$0xff] }
 0x269   : > { %v1697_v20 = vadd.f32 %v1696_v11, %v1695_v14  ;;  %v1484_v11 = vmul.f32 0.00390625, %v1420_v2  ;;  %v1422_v14 = vld [vmem:[#allocation2 + $0x1a8] sm:$0xff]  ;;  %v1611_v18 = vmul.f32 %v1547_v9, %v1483_v5  ;;  %v1722_v25 = vsel %vm1300_vm3, %v1610_v12, 0.0  ;;  %v1557_v5 = vld [vmem:[%s3021_s2 + $0x1e0] sm:$0xff] }
 0x26b   : > { %v1699_v26 = vadd.f32 %v1698_v17, %v1697_v20  ;;  %v1485_v17 = vmul.f32 0.00390625, %v1421_v8  ;;  %v1423_v20 = vld [vmem:[#allocation2 + $0x1b0] sm:$0xff]  ;;  %v1612_v24 = vmul.f32 %v1548_v15, %v1484_v11  ;;  %v1724_v31 = vsel %vm1300_vm3, %v1611_v18, 0.0  ;;  %v1558_v11 = vld [vmem:[%s3021_s2 + $0x1e8] sm:$0xff] }
 0x26d   : > { %v1701_v32 = vadd.f32 %v1700_v23, %v1699_v26  ;;  %v1486_v23 = vmul.f32 0.00390625, %v1422_v14  ;;  %v1424_v26 = vld [vmem:[#allocation2 + $0x1b8] sm:$0xff]  ;;  %v1613_v30 = vmul.f32 %v1549_v21, %v1485_v17  ;;  %v1726_v37 = vsel %vm1300_vm3, %v1612_v24, 0.0 }
 0x26e   : > { %v1560_v21 = vld [vmem:[%s3021_s2 + $0x1f8] sm:$0xff] }
 0x26f   : > { %v1703_v38 = vadd.f32 %v1702_v29, %v1701_v32  ;;  %v1487_v29 = vmul.f32 0.00390625, %v1423_v20  ;;  %v1425_v32 = vld [vmem:[#allocation2 + $0x1c0] sm:$0xff]  ;;  %v1614_v36 = vmul.f32 %v1550_v27, %v1486_v23  ;;  %v1728_v43 = vsel %vm1300_vm3, %v1613_v30, 0.0 }
 0x271   : > { %v1705_v44 = vadd.f32 %v1704_v35, %v1703_v38  ;;  %v1488_v35 = vmul.f32 0.00390625, %v1424_v26  ;;  %v1426_v38 = vld [vmem:[#allocation2 + $0x1c8] sm:$0xff]  ;;  %v1615_v42 = vmul.f32 %v1551_v33, %v1487_v29  ;;  %v1730_v49 = vsel %vm1300_vm3, %v1614_v36, 0.0 }
 0x273   : > { %v1707_v50 = vadd.f32 %v1706_v41, %v1705_v44  ;;  %v1489_v41 = vmul.f32 0.00390625, %v1425_v32  ;;  %v1427_v44 = vld [vmem:[#allocation2 + $0x1d0] sm:$0xff]  ;;  %v1616_v48 = vmul.f32 %v1552_v39, %v1488_v35  ;;  %v1732_v55 = vsel %vm1300_vm3, %v1615_v42, 0.0 }
 0x274   : > { %v1759_v39 = vstv %s1758_s14 }
 0x275   : > { %v1709_v56 = vadd.f32 %v1708_v47, %v1707_v50  ;;  %v1490_v47 = vmul.f32 0.00390625, %v1426_v38  ;;  %v1428_v50 = vld [vmem:[#allocation2 + $0x1d8] sm:$0xff]  ;;  %v1617_v54 = vmul.f32 %v1553_v45, %v1489_v41  ;;  %v1734_v61 = vsel %vm1300_vm3, %v1616_v48, 0.0 }
 0x276   : > { %v1765_v48 = vstv %s1763_s17 }
 0x277   : > { %v1711_v62 = vadd.f32 %v1710_v53, %v1709_v56  ;;  %v1491_v53 = vmul.f32 0.00390625, %v1427_v44  ;;  %v1429_v56 = vld [vmem:[#allocation2 + $0x1e0] sm:$0xff]  ;;  %v1618_v60 = vmul.f32 %v1554_v51, %v1490_v47  ;;  %v1736_v3 = vsel %vm1300_vm3, %v1617_v54, 0.0 }
 0x279   : > { %v1713_v4 = vadd.f32 %v1712_v59, %v1711_v62  ;;  %v1492_v59 = vmul.f32 0.00390625, %v1428_v50  ;;  %v1430_v62 = vld [vmem:[#allocation2 + $0x1e8] sm:$0xff]  ;;  %v1619_v2 = vmul.f32 %v1555_v57, %v1491_v53  ;;  %v1738_v9 = vsel %vm1300_vm3, %v1618_v60, 0.0 }
 0x27b   : > { %v1715_v10 = vadd.f32 %v1714_v1, %v1713_v4  ;;  %v1493_v1 = vmul.f32 0.00390625, %v1429_v56  ;;  %v1431_v4 = vld [vmem:[#allocation2 + $0x1f0] sm:$0xff]  ;;  %v1620_v8 = vmul.f32 %v1556_v63, %v1492_v59  ;;  %v1740_v15 = vsel %vm1300_vm3, %v1619_v2, 0.0 }
 0x27d   : > { %v1717_v16 = vadd.f32 %v1716_v7, %v1715_v10  ;;  %v1494_v7 = vmul.f32 0.00390625, %v1430_v62  ;;  %v1432_v10 = vld [vmem:[#allocation2 + $0x1f8] sm:$0xff]  ;;  %v1621_v14 = vmul.f32 %v1557_v5, %v1493_v1  ;;  %v1742_v20 = vsel %vm1300_vm3, %v1620_v8, 0.0 }
 0x27e   : > { %v1496_v18 = vmul.f32 0.00390625, %v1432_v10 }
 0x27f   : > { %v1719_v22 = vadd.f32 %v1718_v13, %v1717_v16  ;;  %v1495_v13 = vmul.f32 0.00390625, %v1431_v4  ;;  %v1559_v16 = vld [vmem:[%s3021_s2 + $0x1f0] sm:$0xff]  ;;  %v1744_v24 = vsel %vm1300_vm3, %v1621_v14, 0.0 }
 0x280   : > { %v1624_v26 = vmul.f32 %v1560_v21, %v1496_v18 }
 0x281   : > { %v1721_v28 = vadd.f32 %v1720_v19, %v1719_v22  ;;  %v1622_v19 = vmul.f32 %v1558_v11, %v1494_v7  ;;  %v1623_v23 = vmul.f32 %v1559_v16, %v1495_v13 }
 0x283   : > { %v1723_v34 = vadd.f32 %v1722_v25, %v1721_v28  ;;  %v1746_v27 = vsel %vm1300_vm3, %v1622_v19, 0.0  ;;  %v1748_v29 = vsel %vm1300_vm3, %v1623_v23, 0.0 }
 0x285   : > { %v1725_v40 = vadd.f32 %v1724_v31, %v1723_v34  ;;  %v1750_v31 = vsel %vm1300_vm3, %v1624_v26, 0.0 }
 0x287   : > { %v1727_v46 = vadd.f32 %v1726_v37, %v1725_v40 }
 0x289   : > { %v1729_v52 = vadd.f32 %v1728_v43, %v1727_v46 }
 0x28b   : > { %v1731_v58 = vadd.f32 %v1730_v49, %v1729_v52 }
 0x28d   : > { %v1733_v0 = vadd.f32 %v1732_v55, %v1731_v58 }
 0x28f   : > { %v1735_v6 = vadd.f32 %v1734_v61, %v1733_v0 }
 0x291   : > { %v1737_v12 = vadd.f32 %v1736_v3, %v1735_v6 }
 0x293   : > { %v1739_v17 = vadd.f32 %v1738_v9, %v1737_v12 }
 0x295   : > { %v1741_v22 = vadd.f32 %v1740_v15, %v1739_v17 }
 0x297   : > { %v1743_v25 = vadd.f32 %v1742_v20, %v1741_v22 }
 0x299   : > { %v1745_v28 = vadd.f32 %v1744_v24, %v1743_v25 }
 0x29b   : > { %v1747_v30 = vadd.f32 %v1746_v27, %v1745_v28 }
 0x29d   : > { %v1749_v32 = vadd.f32 %v1748_v29, %v1747_v30 }
 0x29f   : > { %v1751_v33 = vadd.f32 %v1750_v31, %v1749_v32 }
 0x2a1   : > { %v1752_v34 = vrot.slane %v1751_v33, 4 }
 0x2a3   : > { %v1753_v35 = vadd.f32 %v1752_v34, %v1751_v33 }
 0x2a5   : > { %v1754_v36 = vrot.slane %v1753_v35, 2 }
 0x2a7   : > { %v1755_v37 = vadd.f32 %v1754_v36, %v1753_v35 }
 0x2a9   : > { %v1756_v38 = vrot.slane %v1755_v37, 1 }
 0x2ab   : > { %v1757_v40 = vadd.f32 %v1756_v38, %v1755_v37 }
 0x2ad   : > { %v1760_v41 = vadd.f32 %v1759_v39, %v1757_v40 }
 0x2af   : > { %1762 = vst.msk [vmem:[%s291_s18] sm:$0x1] %vm1761_vm4, %v1760_v41  ;;  %v1768_v42 = vand.u32 2147483647, %v1760_v41  ;;  %v1764_v50 = vmax.f32 %v1760_v41, 0.0  ;;  %v1766_v51 = vmul.f32 %v1765_v48, %v1760_v41 }
 0x2b1   : > { %v1769_v43 = vsub.f32 0.0, %v1768_v42  ;;  %v1767_v55 = vsub.f32 %v1764_v50, %v1766_v51 }
 0x2b3   : > { %v1770_v44 = vmul.f32 1.442695, %v1769_v43 }
 0x2b5   : > { %2149 = vpow2.f32 %v1770_v44 }
 0x2bf   : > { %v2150_v45 = vpop.eup %2149 }
 0x2c0   : > { %v1772_v46 = vadd.f32 1.0, %v2150_v45  ;;  %v1775_v47 = vmul.f32 -0.5, %v2150_v45  ;;  %v1778_v52 = vand.u32 2147483647, %v2150_v45 }
 0x2c2   : > { %2151 = vlog2.f32 %v1772_v46  ;;  %v1776_v49 = vadd.f32 1.0, %v1775_v47  ;;  %vm1779_vm5 = vcmp.lt.f32.partialorder %v1778_v52, 0.0004427343 }
 0x2c4   : > { %v1777_v53 = vmul.f32 %v2150_v45, %v1776_v49 }
 0x2cc   : > { %v2152_v54 = vpop.eup %2151 }
 0x2cd   : > { %v1774_v56 = vmul.f32 0.6931472, %v2152_v54 }
 0x2cf   : > { %v1780_v57 = vsel %vm1779_vm5, %v1777_v53, %v1774_v56 }
 0x2d0   : > { %v1781_v58 = vadd.f32 %v1780_v57, %v1767_v55 }
 0x2d2   : > { %1782 = vst.msk [vmem:[%s294_s22] sm:$0x1] %vm1761_vm4, %v1781_v58 }
 0x2d3 PF: > { %s19_s27 = sadd.s32 1, %s2210_s27   ;;  %s3028_s23 = smov %s2202_s25 }
 0x2d4   : > { %p16_p6 = scmp.ge.s32.totalorder %s19_s27, 6   ;;  %s3029_s24 = smov %s2206_s26 }
 0x2d5   : > { %s3030_s25 = smov %s3033_s28  ;;  %s3031_s26 = smov %s3037_s29 }
 0x2d6   :  { %18 = sbr.rel (!%p16_p6) target bundleno = 5 (0x5), region = 95 }
 0x2dd   :  { %1812 = vsyncpa [#allocation5], 1 }
 0x2de   :  { %1814 = vsyncpa [#allocation5 + $0x1], 1 }

</bundles_post_ra>
